<compile_context>
chip_gen: v7x
topology: tpu7x:2x2x1
jax: 0.10.0
libtpu: 0.0.40
codegen_flags: <defaults>
</compile_context>

<pallas_src>
import jax
import jax.numpy as jnp
from jax.experimental import pallas as pl
from jax.experimental.pallas import tpu as pltpu

H1, H2, H3 = 1024, 512, 300
H3_PAD = 512          # lane-aligned padding of the 300-wide hidden layer
OUT_LANES = 128       # lane-dense output width (sliced to 1 outside the kernel)


def _round_up(x, m):
    return (x + m - 1) // m * m


def critic_kernel(x_ref, a_ref,
                  w1_ref, b1_ref,
                  w2x_ref, w2a_ref, b2_ref,
                  w3_ref, b3_ref,
                  w4_ref, b4_ref,
                  out_ref):
    x = x_ref[...]                                    # bf16 (TB, obs)
    a = a_ref[...]                                    # bf16 (TB, act)

    # linear1 + relu
    h1 = jnp.dot(x, w1_ref[...], preferred_element_type=jnp.float32) + b1_ref[...]
    h1 = jnp.maximum(h1, 0.0).astype(jnp.bfloat16)

    # cat([h1, a], 1) @ W2 + b2 as a split matmul, then relu
    h2 = (jnp.dot(h1, w2x_ref[...], preferred_element_type=jnp.float32)
          + jnp.dot(a, w2a_ref[...], preferred_element_type=jnp.float32)
          + b2_ref[...])
    h2 = jnp.maximum(h2, 0.0).astype(jnp.bfloat16)

    # linear3 + relu (output lane-padded 300 -> 512 with zeros; exact)
    h3 = jnp.dot(h2, w3_ref[...], preferred_element_type=jnp.float32) + b3_ref[...]
    h3 = jnp.maximum(h3, 0.0)                         # f32 (TB, H3_PAD)

    # linear4 (N=1): VPU multiply + lane reduction instead of an almost-empty
    # MXU tile; write a lane-dense (TB, 128) block (no masked vst).
    w4row = w4_ref[...].astype(jnp.float32)           # (1, H3_PAD)
    q = jnp.sum(h3 * w4row, axis=-1, keepdims=True) + b4_ref[0, 0]   # (TB, 1)
    out_ref[...] = jnp.broadcast_to(q, out_ref.shape)


def critic_forward(x, a, params, *, block_batch=128):
    (w1, b1, w2x, w2a, b2, w3, b3, w4row, b4) = params
    B, obs_dim = x.shape
    act_dim = a.shape[1]

    # Batch tile: 128 for real training batches, small aligned tile otherwise.
    TB = block_batch if B >= block_batch else _round_up(max(B, 1), 16)
    B_pad = _round_up(B, TB)
    if B_pad != B:
        x = jnp.pad(x, ((0, B_pad - B), (0, 0)))
        a = jnp.pad(a, ((0, B_pad - B), (0, 0)))
    xb = x.astype(jnp.bfloat16)
    ab = a.astype(jnp.bfloat16)

    batch_map = lambda i: (i, 0)
    const_map = lambda i: (0, 0)

    out = pl.pallas_call(
        critic_kernel,
        grid=(B_pad // TB,),
        out_shape=jax.ShapeDtypeStruct((B_pad, OUT_LANES), jnp.float32),
        in_specs=[
            pl.BlockSpec((TB, obs_dim), batch_map),        # x (bf16)
            pl.BlockSpec((TB, act_dim), batch_map),        # a (bf16)
            pl.BlockSpec((obs_dim, H1), const_map),        # w1 (bf16, resident)
            pl.BlockSpec((1, H1), const_map),              # b1 (f32)
            pl.BlockSpec((H1, H2), const_map),             # w2x (bf16)
            pl.BlockSpec((act_dim, H2), const_map),        # w2a (bf16)
            pl.BlockSpec((1, H2), const_map),              # b2 (f32)
            pl.BlockSpec((H2, H3_PAD), const_map),         # w3 padded (bf16)
            pl.BlockSpec((1, H3_PAD), const_map),          # b3 padded (f32)
            pl.BlockSpec((1, H3_PAD), const_map),          # w4 row padded (bf16)
            pl.BlockSpec(memory_space=pltpu.MemorySpace.SMEM),  # b4 scalar (1,1)
        ],
        out_specs=pl.BlockSpec((TB, OUT_LANES), batch_map),
        compiler_params=pltpu.CompilerParams(
            dimension_semantics=("parallel",),
            vmem_limit_bytes=32 << 20,
        ),
    )(xb, ab, w1, b1, w2x, w2a, b2, w3, b3, w4row, b4)

    return out[:B, :1]


def init_params(key, obs_dim, action_dim):
    ks = jax.random.split(key, 8)

    def lin(kw, kb, fan_in, fan_out):
        bound = 1.0 / jnp.sqrt(fan_in)
        w = jax.random.uniform(kw, (fan_in, fan_out), jnp.float32, -bound, bound)
        b = jax.random.uniform(kb, (1, fan_out), jnp.float32, -bound, bound)
        return w, b

    w1, b1 = lin(ks[0], ks[1], obs_dim, H1)
    w2, b2 = lin(ks[2], ks[3], H1 + action_dim, H2)
    w2x, w2a = w2[:H1, :], w2[H1:, :]
    w3, b3 = lin(ks[4], ks[5], H2, H3)
    w4, b4 = lin(ks[6], ks[7], H3, 1)

    # Zero-pad the 300-wide layer to H3_PAD lanes (exact transformation).
    w3p = jnp.pad(w3, ((0, 0), (0, H3_PAD - H3)))
    b3p = jnp.pad(b3, ((0, 0), (0, H3_PAD - H3)))
    w4row = jnp.pad(w4.T, ((0, 0), (0, H3_PAD - H3)))   # (1, H3_PAD)
    b4s = b4.reshape(1, 1)

    # bf16 weights; biases stay f32 (added after f32 accumulation).
    bf = lambda t: t.astype(jnp.bfloat16)
    return (bf(w1), b1, bf(w2x), bf(w2a), b2, bf(w3p), b3p, bf(w4row), b4s)


def critic_ref(x, a, params):
    # Pure-JAX reference mirroring the kernel's numerics (bf16 weights/acts,
    # f32 accumulation), matching the original PyTorch forward semantics.
    (w1, b1, w2x, w2a, b2, w3, b3, w4row, b4) = params
    xb = x.astype(jnp.bfloat16)
    ab = a.astype(jnp.bfloat16)
    h1 = jnp.maximum(jnp.dot(xb, w1, preferred_element_type=jnp.float32) + b1, 0.0)
    h1 = h1.astype(jnp.bfloat16)
    h2 = jnp.maximum(jnp.dot(h1, w2x, preferred_element_type=jnp.float32)
                     + jnp.dot(ab, w2a, preferred_element_type=jnp.float32) + b2, 0.0)
    h2 = h2.astype(jnp.bfloat16)
    h3 = jnp.maximum(jnp.dot(h2, w3, preferred_element_type=jnp.float32) + b3, 0.0)
    return jnp.sum(h3 * w4row.astype(jnp.float32), axis=-1, keepdims=True) + b4[0, 0]


if __name__ == "__main__":
    obs_dim, action_dim, batch = 32, 8, 4

    key = jax.random.PRNGKey(0)
    kx, ka, kp = jax.random.split(key, 3)
    x = jax.random.normal(kx, (batch, obs_dim), jnp.float32)
    a = jax.random.normal(ka, (batch, action_dim), jnp.float32)
    params = init_params(kp, obs_dim, action_dim)

    qval = jax.block_until_ready(critic_forward(x, a, params))
    ref = jax.block_until_ready(critic_ref(x, a, params))

    assert qval.shape == (batch, 1)
    assert jnp.allclose(qval, ref, atol=1e-3, rtol=1e-3), (qval, ref)

    print("KERNEL_OK")
</pallas_src>

<mosaic_0001>
module attributes {stable_mosaic.version = 11 : i64} {
  func.func @critic_kernel(%arg0: i32, %arg1: memref<16x32xbf16, #tpu.memory_space<vmem>>, %arg2: memref<16x8xbf16, #tpu.memory_space<vmem>>, %arg3: memref<32x1024xbf16, #tpu.memory_space<vmem>>, %arg4: memref<1x1024xf32, #tpu.memory_space<vmem>>, %arg5: memref<1024x512xbf16, #tpu.memory_space<vmem>>, %arg6: memref<8x512xbf16, #tpu.memory_space<vmem>>, %arg7: memref<1x512xf32, #tpu.memory_space<vmem>>, %arg8: memref<512x512xbf16, #tpu.memory_space<vmem>>, %arg9: memref<1x512xf32, #tpu.memory_space<vmem>>, %arg10: memref<1x512xbf16, #tpu.memory_space<vmem>>, %arg11: memref<1x1xf32, #tpu.memory_space<smem>>, %arg12: memref<16x128xf32, #tpu.memory_space<vmem>>) attributes {dimension_semantics = [#tpu.dimension_semantics<parallel>], iteration_bounds = array<i64: 1>, scalar_prefetch = 0 : i64, scratch_operands = 0 : i64, tpu.core_type = #tpu.core_type<tc>, window_params = [{transform_indices = @transform_0, window_bounds = array<i64: 16, 32>}, {transform_indices = @transform_1, window_bounds = array<i64: 16, 8>}, {pipeline_mode = #tpu.pipeline_mode<synchronous>, transform_indices = @transform_2, window_bounds = array<i64: 32, 1024>}, {pipeline_mode = #tpu.pipeline_mode<synchronous>, transform_indices = @transform_3, window_bounds = array<i64: 1, 1024>}, {pipeline_mode = #tpu.pipeline_mode<synchronous>, transform_indices = @transform_4, window_bounds = array<i64: 1024, 512>}, {pipeline_mode = #tpu.pipeline_mode<synchronous>, transform_indices = @transform_5, window_bounds = array<i64: 8, 512>}, {pipeline_mode = #tpu.pipeline_mode<synchronous>, transform_indices = @transform_6, window_bounds = array<i64: 1, 512>}, {pipeline_mode = #tpu.pipeline_mode<synchronous>, transform_indices = @transform_7, window_bounds = array<i64: 512, 512>}, {pipeline_mode = #tpu.pipeline_mode<synchronous>, transform_indices = @transform_8, window_bounds = array<i64: 1, 512>}, {pipeline_mode = #tpu.pipeline_mode<synchronous>, transform_indices = @transform_9, window_bounds = array<i64: 1, 512>}, {transform_indices = @transform_10, window_bounds = array<i64: 1, 1>}, {transform_indices = @transform_11, window_bounds = array<i64: 16, 128>}]} {
    %c0 = arith.constant 0 : index
    %c0_0 = arith.constant 0 : index
    %0 = vector.load %arg1[%c0, %c0_0] : memref<16x32xbf16, #tpu.memory_space<vmem>>, vector<16x32xbf16>
    %c0_1 = arith.constant 0 : index
    %c0_2 = arith.constant 0 : index
    %1 = vector.load %arg2[%c0_1, %c0_2] : memref<16x8xbf16, #tpu.memory_space<vmem>>, vector<16x8xbf16>
    %c0_3 = arith.constant 0 : index
    %c0_4 = arith.constant 0 : index
    %2 = vector.load %arg3[%c0_3, %c0_4] : memref<32x1024xbf16, #tpu.memory_space<vmem>>, vector<32x1024xbf16>
    %cst = arith.constant dense<0.000000e+00> : vector<16x1024xf32>
    %3 = tpu.matmul %0, %2, %cst {dimension_numbers = #tpu.dot_dimension_numbers<[1], [0], [0], [1], [0, 0, 1, 1], [], []>} : vector<16x32xbf16>, vector<32x1024xbf16>, vector<16x1024xf32> -> vector<16x1024xf32>
    %c0_5 = arith.constant 0 : index
    %c0_6 = arith.constant 0 : index
    %4 = vector.load %arg4[%c0_5, %c0_6] : memref<1x1024xf32, #tpu.memory_space<vmem>>, vector<1x1024xf32>
    %5 = vector.broadcast %4 : vector<1x1024xf32> to vector<16x1024xf32>
    %6 = arith.addf %3, %5 : vector<16x1024xf32>
    %cst_7 = arith.constant 0.000000e+00 : f32
    %7 = vector.broadcast %cst_7 : f32 to vector<16x1024xf32>
    %8 = arith.maximumf %6, %7 : vector<16x1024xf32>
    %9 = arith.truncf %8 : vector<16x1024xf32> to vector<16x1024xbf16>
    %c0_8 = arith.constant 0 : index
    %c0_9 = arith.constant 0 : index
    %10 = vector.load %arg5[%c0_8, %c0_9] : memref<1024x512xbf16, #tpu.memory_space<vmem>>, vector<1024x512xbf16>
    %cst_10 = arith.constant dense<0.000000e+00> : vector<16x512xf32>
    %11 = tpu.matmul %9, %10, %cst_10 {dimension_numbers = #tpu.dot_dimension_numbers<[1], [0], [0], [1], [0, 0, 1, 1], [], []>} : vector<16x1024xbf16>, vector<1024x512xbf16>, vector<16x512xf32> -> vector<16x512xf32>
    %c0_11 = arith.constant 0 : index
    %c0_12 = arith.constant 0 : index
    %12 = vector.load %arg6[%c0_11, %c0_12] : memref<8x512xbf16, #tpu.memory_space<vmem>>, vector<8x512xbf16>
    %cst_13 = arith.constant dense<0.000000e+00> : vector<16x512xf32>
    %13 = tpu.matmul %1, %12, %cst_13 {dimension_numbers = #tpu.dot_dimension_numbers<[1], [0], [0], [1], [0, 0, 1, 1], [], []>} : vector<16x8xbf16>, vector<8x512xbf16>, vector<16x512xf32> -> vector<16x512xf32>
    %14 = arith.addf %11, %13 : vector<16x512xf32>
    %c0_14 = arith.constant 0 : index
    %c0_15 = arith.constant 0 : index
    %15 = vector.load %arg7[%c0_14, %c0_15] : memref<1x512xf32, #tpu.memory_space<vmem>>, vector<1x512xf32>
    %16 = vector.broadcast %15 : vector<1x512xf32> to vector<16x512xf32>
    %17 = arith.addf %14, %16 : vector<16x512xf32>
    %cst_16 = arith.constant 0.000000e+00 : f32
    %18 = vector.broadcast %cst_16 : f32 to vector<16x512xf32>
    %19 = arith.maximumf %17, %18 : vector<16x512xf32>
    %20 = arith.truncf %19 : vector<16x512xf32> to vector<16x512xbf16>
    %c0_17 = arith.constant 0 : index
    %c0_18 = arith.constant 0 : index
    %21 = vector.load %arg8[%c0_17, %c0_18] : memref<512x512xbf16, #tpu.memory_space<vmem>>, vector<512x512xbf16>
    %cst_19 = arith.constant dense<0.000000e+00> : vector<16x512xf32>
    %22 = tpu.matmul %20, %21, %cst_19 {dimension_numbers = #tpu.dot_dimension_numbers<[1], [0], [0], [1], [0, 0, 1, 1], [], []>} : vector<16x512xbf16>, vector<512x512xbf16>, vector<16x512xf32> -> vector<16x512xf32>
    %c0_20 = arith.constant 0 : index
    %c0_21 = arith.constant 0 : index
    %23 = vector.load %arg9[%c0_20, %c0_21] : memref<1x512xf32, #tpu.memory_space<vmem>>, vector<1x512xf32>
    %24 = vector.broadcast %23 : vector<1x512xf32> to vector<16x512xf32>
    %25 = arith.addf %22, %24 : vector<16x512xf32>
    %cst_22 = arith.constant 0.000000e+00 : f32
    %26 = vector.broadcast %cst_22 : f32 to vector<16x512xf32>
    %27 = arith.maximumf %25, %26 : vector<16x512xf32>
    %c0_23 = arith.constant 0 : index
    %c0_24 = arith.constant 0 : index
    %28 = vector.load %arg10[%c0_23, %c0_24] : memref<1x512xbf16, #tpu.memory_space<vmem>>, vector<1x512xbf16>
    %29 = arith.extf %28 : vector<1x512xbf16> to vector<1x512xf32>
    %30 = vector.broadcast %29 : vector<1x512xf32> to vector<16x512xf32>
    %31 = arith.mulf %27, %30 : vector<16x512xf32>
    %cst_25 = arith.constant dense<0.000000e+00> : vector<16xf32>
    %32 = vector.multi_reduction <add>, %31, %cst_25 [1] : vector<16x512xf32> to vector<16xf32>
    %33 = vector.shape_cast %32 : vector<16xf32> to vector<16x1xf32>
    %c0_26 = arith.constant 0 : index
    %c0_27 = arith.constant 0 : index
    %34 = memref.load %arg11[%c0_26, %c0_27] : memref<1x1xf32, #tpu.memory_space<smem>>
    %35 = vector.broadcast %34 : f32 to vector<16x1xf32>
    %36 = arith.addf %33, %35 : vector<16x1xf32>
    %37 = vector.shape_cast %36 : vector<16x1xf32> to vector<16x1xf32>
    %38 = vector.broadcast %37 : vector<16x1xf32> to vector<16x128xf32>
    %c0_28 = arith.constant 0 : index
    %c0_29 = arith.constant 0 : index
    %39 = vector.load %arg12[%c0_28, %c0_29] : memref<16x128xf32, #tpu.memory_space<vmem>>, vector<16x128xf32>
    tpu.vector_store %arg12[%c0_28, %c0_29], %38 {strides = array<i32>} : memref<16x128xf32, #tpu.memory_space<vmem>>, vector<16x128xf32>,
    return
  }
  func.func @transform_0(%arg0: i32) -> (i32, i32) {
    %c0_i32 = arith.constant 0 : i32
    %c0_i32_0 = arith.constant 0 : i32
    return %arg0, %c0_i32 : i32, i32
  }
  func.func @transform_1(%arg0: i32) -> (i32, i32) {
    %c0_i32 = arith.constant 0 : i32
    %c0_i32_0 = arith.constant 0 : i32
    return %arg0, %c0_i32 : i32, i32
  }
  func.func @transform_2(%arg0: i32) -> (i32, i32) {
    %c0_i32 = arith.constant 0 : i32
    %c0_i32_0 = arith.constant 0 : i32
    %c0_i32_1 = arith.constant 0 : i32
    return %c0_i32, %c0_i32_0 : i32, i32
  }
  func.func @transform_3(%arg0: i32) -> (i32, i32) {
    %c0_i32 = arith.constant 0 : i32
    %c0_i32_0 = arith.constant 0 : i32
    %c0_i32_1 = arith.constant 0 : i32
    return %c0_i32, %c0_i32_0 : i32, i32
  }
  func.func @transform_4(%arg0: i32) -> (i32, i32) {
    %c0_i32 = arith.constant 0 : i32
    %c0_i32_0 = arith.constant 0 : i32
    %c0_i32_1 = arith.constant 0 : i32
    return %c0_i32, %c0_i32_0 : i32, i32
  }
  func.func @transform_5(%arg0: i32) -> (i32, i32) {
    %c0_i32 = arith.constant 0 : i32
    %c0_i32_0 = arith.constant 0 : i32
    %c0_i32_1 = arith.constant 0 : i32
    return %c0_i32, %c0_i32_0 : i32, i32
  }
  func.func @transform_6(%arg0: i32) -> (i32, i32) {
    %c0_i32 = arith.constant 0 : i32
    %c0_i32_0 = arith.constant 0 : i32
    %c0_i32_1 = arith.constant 0 : i32
    return %c0_i32, %c0_i32_0 : i32, i32
  }
  func.func @transform_7(%arg0: i32) -> (i32, i32) {
    %c0_i32 = arith.constant 0 : i32
    %c0_i32_0 = arith.constant 0 : i32
    %c0_i32_1 = arith.constant 0 : i32
    return %c0_i32, %c0_i32_0 : i32, i32
  }
  func.func @transform_8(%arg0: i32) -> (i32, i32) {
    %c0_i32 = arith.constant 0 : i32
    %c0_i32_0 = arith.constant 0 : i32
    %c0_i32_1 = arith.constant 0 : i32
    return %c0_i32, %c0_i32_0 : i32, i32
  }
  func.func @transform_9(%arg0: i32) -> (i32, i32) {
    %c0_i32 = arith.constant 0 : i32
    %c0_i32_0 = arith.constant 0 : i32
    %c0_i32_1 = arith.constant 0 : i32
    return %c0_i32, %c0_i32_0 : i32, i32
  }
  func.func @transform_10(%arg0: i32) -> (i32, i32) {
    %c0_i32 = arith.constant 0 : i32
    %c0_i32_0 = arith.constant 0 : i32
    %c0_i32_1 = arith.constant 0 : i32
    return %c0_i32, %c0_i32_0 : i32, i32
  }
  func.func @transform_11(%arg0: i32) -> (i32, i32) {
    %c0_i32 = arith.constant 0 : i32
    %c0_i32_0 = arith.constant 0 : i32
    return %arg0, %c0_i32 : i32, i32
  }
}

</mosaic_0001>

<bundles_post_ra>
// kernel: tpu_custom_call.1
= control target key start
LH: loop header
LB: loop body
LE: loop exit
PB: predicated region body
PF: predicated region fallthrough
CT: control target
= control target key end

     0   :  { %17 = vsyncpa [#allocation4], 0  ;;  %s4960_s0 = inlined_call_operand.vmem [shape: bf16[16,32], index: 0, kind: input, shape index: {}]   ;;  %s4961_s1 = inlined_call_operand.vmem [shape: bf16[16,8], index: 1, kind: input, shape index: {}]   ;;  %s4962_s2 = inlined_call_operand.hbm [shape: bf16[32,1024], index: 2, kind: input, shape index: {}]   ;;  %s4963_s3 = inlined_call_operand.hbm [shape: f32[1,1024], index: 3, kind: input, shape index: {}]   ;;  %s4964_s4 = inlined_call_operand.hbm [shape: bf16[1024,512], index: 4, kind: input, shape index: {}]   ;;  %s4965_s5 = inlined_call_operand.vmem [shape: bf16[8,512], index: 5, kind: input, shape index: {}]   ;;  %s4966_s6 = inlined_call_operand.vmem [shape: f32[1,512], index: 6, kind: input, shape index: {}]   ;;  %s4967_s7 = inlined_call_operand.hbm [shape: bf16[512,512], index: 7, kind: input, shape index: {}]   ;;  %s4968_s8 = inlined_call_operand.vmem [shape: f32[1,512], index: 8, kind: input, shape index: {}]   ;;  %s4969_s9 = inlined_call_operand.vmem [shape: bf16[1,512], index: 9, kind: input, shape index: {}]   ;;  %s4970_s10 = inlined_call_operand.<no memory space> [shape: f32[1,1], index: 10, kind: input, shape index: {}]   ;;  %s4971_s11 = inlined_call_operand.hbm [shape: f32[16,128], index: 11, kind: output, shape index: {}]  }
   0x1   :  { %18 = vsyncpa [#allocation7], 0 }
   0x2   :  { %19 = vsyncpa [#allocation10], 0 }
   0x3   :  { %20 = vsyncpa [#allocation5], 0  ;;  %s4709_s17 = smov [#allocation6]   ;;  %s4710_s19 = smov [#allocation3]  }
   0x4   :  { %s43_s18 = sshll.u32 %s4709_s17, 4  ;;  %s30_s20 = sshll.u32 %s4710_s19, 4  ;;  %s44_s18 = int_to_ptr.vmem [resolvable:$true] %s43_s18  ;;  %s4781_s20 = int_to_ptr.vmem [resolvable:$true] %s30_s20 }
   0x5   :  { %s4591_s23 = scalar_lea.hbm %s4963_s3, 128 }
   0x6   :  { %p4592_p0 = scmp.ne.s32.totalorder %s4963_s3, %s4591_s23  ;;  %p4595_p1 = scmp.lt.u32.totalorder %s4591_s23, %s4963_s3 }
   0x8   :  { %p4597_p2 = pnand %p4595_p1, %p4592_p0 }
   0xa   :  { %4600 = shalt.err (!%p4597_p2)
}
   0xb   :  { %s4601_s28 = scalar_lea.vmem %s44_s18, 128  ;;  %p4606_p4 = scmp.lt.s32.totalorder %s44_s18, %s44_s18 }
   0xc   :  { %p4602_p3 = scmp.ne.s32.totalorder %s44_s18, %s4601_s28  ;;  %p4607_p5 = scmp.lt.s32.totalorder %s4601_s28, %s4601_s28 }
   0xe   :  { %p4608_p6 = por %p4607_p5, %p4606_p4 }
  0x10   :  { %p4609_p7 = pnand %p4608_p6, %p4602_p3 }
  0x12   :  { %4612 = shalt.err (!%p4609_p7)
}
  0x13   :  { %46 = dma.hbm_to_vmem [thread:$0]  %s4963_s3, 128, %s44_s18, [#allocation7]  }
  0x14   :  { %s4613_s14 = scalar_lea.hbm %s4962_s2, 2048 }
  0x15   :  { %p4614_p8 = scmp.ne.s32.totalorder %s4962_s2, %s4613_s14  ;;  %p4617_p9 = scmp.lt.u32.totalorder %s4613_s14, %s4962_s2 }
  0x17   :  { %p4619_p10 = pnand %p4617_p9, %p4614_p8 }
  0x19   :  { %4622 = shalt.err (!%p4619_p10)
}
  0x1a   :  { %s4623_s21 = scalar_lea.vmem %s4781_s20, 2048  ;;  %p4628_p12 = scmp.lt.s32.totalorder %s4781_s20, %s4781_s20 }
  0x1b   :  { %p4624_p11 = scmp.ne.s32.totalorder %s4781_s20, %s4623_s21  ;;  %p4629_p13 = scmp.lt.s32.totalorder %s4623_s21, %s4623_s21 }
  0x1d   :  { %p4630_p0 = por %p4629_p13, %p4628_p12 }
  0x1f   :  { %p4631_p1 = pnand %p4630_p0, %p4624_p11 }
  0x21   :  { %4634 = shalt.err (!%p4631_p1)
}
  0x22   :  { %s4711_s3 = smov 512   ;;  %s4712_s18 = smov 32  }
  0x23   :  { %36 = dma.hbm_to_vmem [thread:$0]  %s4962_s2, 2048, %s4781_s20, [#allocation4], %s4711_s3, %s4711_s3, %s4712_s18  }
  0x24   :  { %s4713_s24 = smov [#allocation8]   ;;  %s4635_s28 = scalar_lea.hbm %s4964_s4, 32768 }
  0x25   :  { %s52_s25 = sshll.u32 %s4713_s24, 4  ;;  %p4636_p2 = scmp.ne.s32.totalorder %s4964_s4, %s4635_s28  ;;  %s53_s25 = int_to_ptr.vmem [resolvable:$true] %s52_s25 }
  0x26   :  { %p4639_p3 = scmp.lt.u32.totalorder %s4635_s28, %s4964_s4 }
  0x28   :  { %p4641_p4 = pnand %p4639_p3, %p4636_p2 }
  0x2a   :  { %4644 = shalt.err (!%p4641_p4)
}
  0x2b   :  { %s4645_s14 = scalar_lea.vmem %s53_s25, 32768  ;;  %p4650_p6 = scmp.lt.s32.totalorder %s53_s25, %s53_s25 }
  0x2c   :  { %p4646_p5 = scmp.ne.s32.totalorder %s53_s25, %s4645_s14  ;;  %p4651_p7 = scmp.lt.s32.totalorder %s4645_s14, %s4645_s14 }
  0x2e   :  { %p4652_p8 = por %p4651_p7, %p4650_p6 }
  0x30   :  { %p4653_p9 = pnand %p4652_p8, %p4646_p5 }
  0x32   :  { %4656 = shalt.err (!%p4653_p9)
}
  0x33   :  { %s4714_s2 = smov 256   ;;  %s4715_s20 = smov 16  }
  0x34   :  { %58 = dma.hbm_to_vmem [thread:$0]  %s4964_s4, 32768, %s53_s25, [#allocation7], %s4714_s2, %s4714_s2, %s4715_s20  }
  0x35   :  { %s4716_s17 = smov [#allocation9]   ;;  %s4657_s18 = scalar_lea.hbm %s4967_s7, 16384 }
  0x36   :  { %s68_s19 = sshll.u32 %s4716_s17, 4  ;;  %p4658_p10 = scmp.ne.s32.totalorder %s4967_s7, %s4657_s18  ;;  %s69_s19 = int_to_ptr.vmem [resolvable:$true] %s68_s19 }
  0x37   :  { %p4661_p11 = scmp.lt.u32.totalorder %s4657_s18, %s4967_s7 }
  0x39   :  { %p4663_p12 = pnand %p4661_p11, %p4658_p10 }
  0x3b   :  { %4666 = shalt.err (!%p4663_p12)
}
  0x3c   :  { %s4667_s27 = scalar_lea.vmem %s69_s19, 16384  ;;  %p4672_p0 = scmp.lt.s32.totalorder %s69_s19, %s69_s19 }
  0x3d   :  { %p4668_p13 = scmp.ne.s32.totalorder %s69_s19, %s4667_s27  ;;  %p4673_p1 = scmp.lt.s32.totalorder %s4667_s27, %s4667_s27 }
  0x3f   :  { %p4674_p2 = por %p4673_p1, %p4672_p0 }
  0x41   :  { %p4675_p3 = pnand %p4674_p2, %p4668_p13 }
  0x43   :  { %4678 = shalt.err (!%p4675_p3)
}
  0x44   :  { %74 = dma.hbm_to_vmem [thread:$0]  %s4967_s7, 16384, %s69_s19, [#allocation10], %s4714_s2, %s4714_s2, %s4715_s20  }
  0x45   :  { %4701 = dma.done.wait [#allocation4], 2048  }
  0x46   :  { %4702 = vsyncadd [#allocation4], 4294965248 }
  0x47   :  { %4703 = dma.done.wait [#allocation7], 32896  }
  0x48   :  { %4704 = vsyncadd [#allocation7], 4294934400 }
  0x49   :  { %4705 = dma.done.wait [#allocation10], 16384  }
  0x4a   :  { %4706 = vsyncadd [#allocation10], 4294950912  ;;  %v4717_v0 = vmov 0   ;;  %v98_v1 = vld [vmem:[#allocation3] sm:$0xff]  ;;  %v99_v8 = vld [vmem:[#allocation3 + $0x8] sm:$0xff]  ;;  %vm241_vm0 = vcmask 261120  }
  0x4b   :  { %277 = vmatprep.mubr.bf16.mxu0 %v4717_v0  ;;  %320 = vmatprep.mubr.bf16.mxu1 %v4717_v0  ;;  %v102_v2 = vld [vmem:[#allocation3 + $0x20] sm:$0xff]  ;;  %v103_v9 = vld [vmem:[#allocation3 + $0x28] sm:$0xff]  ;;  %v100_v14 = vld [vmem:[#allocation3 + $0x10] sm:$0xff]  ;;  %vm718_vm1 = vcmask 1043456   ;;  %vm714_vm2 = vcmask 64512   ;;  %s4718_s16 = smov [#allocation11]  }
  0x4c   :  { %v106_v3 = vld [vmem:[#allocation3 + $0x40] sm:$0xff]  ;;  %v3537_v4 = vcombine.high %v98_v1, %v102_v2  ;;  %v3536_v5 = vcombine.low %v98_v1, %v102_v2  ;;  %v3539_v10 = vcombine.high %v99_v8, %v103_v9  ;;  %v3538_v11 = vcombine.low %v99_v8, %v103_v9  ;;  %v107_v12 = vld [vmem:[#allocation3 + $0x48] sm:$0xff]  ;;  %v104_v17 = vld [vmem:[#allocation3 + $0x30] sm:$0xff]  ;;  %s3521_s17 = sshll.u32 %s4718_s16, 4  ;;  %s3522_s17 = int_to_ptr.vmem [resolvable:$true] %s3521_s17 }
  0x4d   :  { %v110_v6 = vld [vmem:[#allocation3 + $0x60] sm:$0xff]  ;;  %v111_v13 = vld [vmem:[#allocation3 + $0x68] sm:$0xff]  ;;  %v3541_v18 = vcombine.high %v100_v14, %v104_v17  ;;  %v101_v19 = vld [vmem:[#allocation3 + $0x18] sm:$0xff]  ;;  %v3540_v27 = vcombine.low %v100_v14, %v104_v17  ;;  %s4679_s19 = scalar_lea.vmem %s3522_s17, 256  ;;  %p4684_p5 = scmp.lt.s32.totalorder %s3522_s17, %s3522_s17 }
  0x4e   :  { %v3545_v7 = vcombine.high %v106_v3, %v110_v6  ;;  %245 = vmatprep.subr.bf16.mxu0 %v3537_v4  ;;  %v3544_v15 = vcombine.low %v106_v3, %v110_v6  ;;  %v3547_v16 = vcombine.high %v107_v12, %v111_v13  ;;  %288 = vmatprep.subr.bf16.mxu1 %v3539_v10  ;;  %v105_v20 = vld [vmem:[#allocation3 + $0x38] sm:$0xff]  ;;  %v4009_v21 = vld [vmem:[%s4960_s0] sm:$0xff]   ;;  %v108_v23 = vld [vmem:[#allocation3 + $0x50] sm:$0xff]  ;;  %p4680_p4 = scmp.ne.s32.totalorder %s3522_s17, %s4679_s19  ;;  %p4685_p6 = scmp.lt.s32.totalorder %s4679_s19, %s4679_s19 }
  0x4f   :  { %246 = vmatpush1.bf16.msra.mxu0 %v3536_v5  ;;  %289 = vmatpush1.bf16.msra.mxu1 %v3538_v11  ;;  %v3546_v22 = vcombine.low %v107_v12, %v111_v13  ;;  %v112_v24 = vld [vmem:[#allocation3 + $0x70] sm:$0xff]  ;;  %v3543_v25 = vcombine.high %v101_v19, %v105_v20  ;;  %v109_v26 = vld [vmem:[#allocation3 + $0x58] sm:$0xff]  ;;  %v697_v30 = vld [vmem:[%s4965_s5] sm:$0xff]  ;;  %v3542_v31 = vcombine.low %v101_v19, %v105_v20 }
  0x50   :  { %247 = vmatprep.subr.bf16.mxu0 %v3545_v7  ;;  %290 = vmatprep.subr.bf16.mxu1 %v3547_v16  ;;  %v113_v28 = vld [vmem:[#allocation3 + $0x78] sm:$0xff]  ;;  %v3549_v29 = vcombine.high %v108_v23, %v112_v24  ;;  %v3548_v33 = vcombine.low %v108_v23, %v112_v24  ;;  %v698_v34 = vld [vmem:[%s4965_s5 + $0x8] sm:$0xff]  ;;  %v3558_v35 = vcombine.high %v697_v30, %v697_v30  ;;  %v4019_v43 = vld [vmem:[#allocation8 + $0xc] ss:$16 sps:$4 sm:$0xff]   ;;  %p4686_p7 = por %p4685_p6, %p4684_p5 }
  0x51   :  { %v3551_v32 = vcombine.high %v109_v26, %v113_v28  ;;  %v3557_v36 = vcombine.low %v697_v30, %v697_v30  ;;  %v3550_v37 = vcombine.low %v109_v26, %v113_v28  ;;  %v3560_v38 = vcombine.high %v698_v34, %v698_v34  ;;  %v4016_v41 = vld [vmem:[#allocation8 + $0x4] ss:$16 sps:$4 sm:$0xff]   ;;  %v4020_v44 = vld [vmem:[%s4961_s1] sm:$0xff]   ;;  %v4014_v45 = vld [vmem:[#allocation8] ss:$16 sps:$4 sm:$0xff]  }
  0x52   :  { %v3559_v39 = vcombine.low %v698_v34, %v698_v34  ;;  %v4023_v46 = vld [vmem:[#allocation8 + $0x24] ss:$16 sps:$4 sm:$0xff]   ;;  %v4017_v47 = vld [vmem:[#allocation8 + $0x8] ss:$16 sps:$4 sm:$0xff]   ;;  %v4026_v48 = vld [vmem:[#allocation8 + $0x2c] ss:$16 sps:$4 sm:$0xff]   ;;  %p4687_p8 = pnand %p4686_p7, %p4680_p4 }
  0x53   :  { %248 = vmatpush1.bf16.msra.mxu0 %v3544_v15  ;;  %291 = vmatpush1.bf16.msra.mxu1 %v3546_v22  ;;  %v720_v40 = vsel %vm718_vm1, %v3557_v36, 0  ;;  %v4021_v49 = vld [vmem:[#allocation8 + $0x20] ss:$16 sps:$4 sm:$0xff]   ;;  %v4029_v50 = vld [vmem:[#allocation8 + $0x44] ss:$16 sps:$4 sm:$0xff]  }
  0x54   :  { %331 = vmatprep.subr.bf16.mxu0 %v3541_v18  ;;  %374 = vmatprep.subr.bf16.mxu1 %v3543_v25  ;;  %v726_v42 = vsel %vm718_vm1, %v3559_v39, 0  ;;  %v4024_v51 = vld [vmem:[#allocation8 + $0x28] ss:$16 sps:$4 sm:$0xff]   ;;  %v4032_v52 = vld [vmem:[#allocation8 + $0x4c] ss:$16 sps:$4 sm:$0xff]  }
  0x55   :  { %v4027_v53 = vld [vmem:[#allocation8 + $0x40] ss:$16 sps:$4 sm:$0xff]   ;;  %v4035_v54 = vld [vmem:[#allocation8 + $0x64] ss:$16 sps:$4 sm:$0xff]   ;;  %v4030_v55 = vld [vmem:[#allocation8 + $0x48] ss:$16 sps:$4 sm:$0xff]  }
  0x56   :  { %3552 = vmatmul.mubr.msk.bf16.vlgmr.msra.gmra.mrb[0].mxu0 %vm241_vm0, %v4009_v21  ;;  %3553 = vmatmul.mubr.msk.bf16.vlgmr.msra.gmra.mrb[0].mxu1 %vm241_vm0, %v4009_v21  ;;  %v4038_v56 = vld [vmem:[#allocation8 + $0x6c] ss:$16 sps:$4 sm:$0xff]   ;;  %v4033_v57 = vld [vmem:[#allocation8 + $0x60] ss:$16 sps:$4 sm:$0xff]   ;;  %v4041_v58 = vld [vmem:[#allocation8 + $0x84] ss:$16 sps:$4 sm:$0xff]  }
  0x57   :  { %332 = vmatpush1.bf16.msra.mxu0 %v3540_v27  ;;  %363 = vmatprep.mubr.bf16.mxu0 %v4717_v0  ;;  %v4036_v59 = vld [vmem:[#allocation8 + $0x68] ss:$16 sps:$4 sm:$0xff]   ;;  %v4044_v60 = vld [vmem:[#allocation8 + $0x8c] ss:$16 sps:$4 sm:$0xff]   ;;  %v4039_v61 = vld [vmem:[#allocation8 + $0x80] ss:$16 sps:$4 sm:$0xff]  }
  0x58   :  { %333 = vmatprep.subr.bf16.mxu0 %v3549_v29  ;;  %375 = vmatpush1.bf16.msra.mxu1 %v3542_v31  ;;  %v4047_v62 = vld [vmem:[#allocation8 + $0xa4] ss:$16 sps:$4 sm:$0xff]   ;;  %v4042_v63 = vld [vmem:[#allocation8 + $0x88] ss:$16 sps:$4 sm:$0xff]   ;;  %v4050_v1 = vld [vmem:[#allocation8 + $0xac] ss:$16 sps:$4 sm:$0xff]  }
  0x59   :  { %406 = vmatprep.mubr.bf16.mxu1 %v4717_v0  ;;  %376 = vmatprep.subr.bf16.mxu1 %v3551_v32  ;;  %v4048_v2 = vld [vmem:[#allocation8 + $0xa8] ss:$16 sps:$4 sm:$0xff]   ;;  %v4053_v3 = vld [vmem:[#allocation8 + $0xc4] ss:$16 sps:$4 sm:$0xff]   ;;  %v4056_v4 = vld [vmem:[#allocation8 + $0xcc] ss:$16 sps:$4 sm:$0xff]  }
  0x5a   :  { %v4051_v5 = vld [vmem:[#allocation8 + $0xc0] ss:$16 sps:$4 sm:$0xff]   ;;  %v4059_v6 = vld [vmem:[#allocation8 + $0xe4] ss:$16 sps:$4 sm:$0xff]   ;;  %v4054_v7 = vld [vmem:[#allocation8 + $0xc8] ss:$16 sps:$4 sm:$0xff]  }
  0x5b   :  { %334 = vmatpush1.bf16.msra.mxu0 %v3548_v33  ;;  %v4062_v8 = vld [vmem:[#allocation8 + $0xec] ss:$16 sps:$4 sm:$0xff]   ;;  %v4057_v9 = vld [vmem:[#allocation8 + $0xe0] ss:$16 sps:$4 sm:$0xff]   ;;  %v4065_v10 = vld [vmem:[#allocation8 + $0x104] ss:$16 sps:$4 sm:$0xff]  }
  0x5c   :  { %3561 = vmatprep.subr.msk.bf16.mxu0 %vm718_vm1, %v3558_v35  ;;  %377 = vmatpush1.bf16.msra.mxu1 %v3550_v37  ;;  %v4060_v11 = vld [vmem:[#allocation8 + $0xe8] ss:$16 sps:$4 sm:$0xff]   ;;  %v4068_v12 = vld [vmem:[#allocation8 + $0x10c] ss:$16 sps:$4 sm:$0xff]   ;;  %v4063_v13 = vld [vmem:[#allocation8 + $0x100] ss:$16 sps:$4 sm:$0xff]  }
  0x5d   :  { %3563 = vmatprep.subr.msk.bf16.mxu1 %vm718_vm1, %v3560_v38  ;;  %v4071_v14 = vld [vmem:[#allocation8 + $0x124] ss:$16 sps:$4 sm:$0xff]   ;;  %v4066_v15 = vld [vmem:[#allocation8 + $0x108] ss:$16 sps:$4 sm:$0xff]   ;;  %v4074_v16 = vld [vmem:[#allocation8 + $0x12c] ss:$16 sps:$4 sm:$0xff]  }
  0x5e   :  { %3554 = vmatmul.mubr.msk.bf16.vlgmr.msra.gmra.mrb[4].mxu0 %vm241_vm0, %v4009_v21  ;;  %v4069_v17 = vld [vmem:[#allocation8 + $0x120] ss:$16 sps:$4 sm:$0xff]   ;;  %v4077_v18 = vld [vmem:[#allocation8 + $0x144] ss:$16 sps:$4 sm:$0xff]   ;;  %v4072_v19 = vld [vmem:[#allocation8 + $0x128] ss:$16 sps:$4 sm:$0xff]  }
  0x5f   :  { %732 = vmatpush1.bf16.msra.mxu0 %v720_v40  ;;  %763 = vmatprep.mubr.bf16.mxu0 %v4717_v0  ;;  %v4080_v20 = vld [vmem:[#allocation8 + $0x14c] ss:$16 sps:$4 sm:$0xff]   ;;  %v4083_v22 = vld [vmem:[#allocation8 + $0x164] ss:$16 sps:$4 sm:$0xff]   ;;  %v4078_v23 = vld [vmem:[#allocation8 + $0x148] ss:$16 sps:$4 sm:$0xff]  }
  0x60   :  { %3555 = vmatmul.mubr.msk.bf16.vlgmr.msra.gmra.mrb[4].mxu1 %vm241_vm0, %v4009_v21  ;;  %2097 = vmatprep.subr.bf16.mxu0 %v4016_v41  ;;  %v4075_v21 = vld [vmem:[#allocation8 + $0x140] ss:$16 sps:$4 sm:$0xff]   ;;  %v4086_v24 = vld [vmem:[#allocation8 + $0x16c] ss:$16 sps:$4 sm:$0xff]   ;;  %v4089_v26 = vld [vmem:[#allocation8 + $0x184] ss:$16 sps:$4 sm:$0xff]  }
  0x61   :  { %775 = vmatpush1.bf16.msra.mxu1 %v726_v42  ;;  %806 = vmatprep.mubr.bf16.mxu1 %v4717_v0  ;;  %v4045_v0 = vld [vmem:[#allocation8 + $0xa0] ss:$16 sps:$4 sm:$0xff]   ;;  %v4084_v27 = vld [vmem:[#allocation8 + $0x168] ss:$16 sps:$4 sm:$0xff]   ;;  %v4092_v28 = vld [vmem:[#allocation8 + $0x18c] ss:$16 sps:$4 sm:$0xff]  }
  0x62   :  { %2269 = vmatprep.subr.bf16.mxu1 %v4019_v43  ;;  %v4081_v25 = vld [vmem:[#allocation8 + $0x160] ss:$16 sps:$4 sm:$0xff]   ;;  %v4095_v30 = vld [vmem:[#allocation8 + $0x1a4] ss:$16 sps:$4 sm:$0xff]   ;;  %v4090_v31 = vld [vmem:[#allocation8 + $0x188] ss:$16 sps:$4 sm:$0xff]  }
  0x63   :  { %v4087_v29 = vld [vmem:[#allocation8 + $0x180] ss:$16 sps:$4 sm:$0xff]   ;;  %v4098_v32 = vld [vmem:[#allocation8 + $0x1ac] ss:$16 sps:$4 sm:$0xff]   ;;  %v4096_v34 = vld [vmem:[#allocation8 + $0x1a8] ss:$16 sps:$4 sm:$0xff]  }
  0x64   :  { %v4093_v33 = vld [vmem:[#allocation8 + $0x1a0] ss:$16 sps:$4 sm:$0xff]   ;;  %v4101_v35 = vld [vmem:[#allocation8 + $0x1c4] ss:$16 sps:$4 sm:$0xff]   ;;  %v4104_v36 = vld [vmem:[#allocation8 + $0x1cc] ss:$16 sps:$4 sm:$0xff]  }
  0x65   :  { %v4099_v37 = vld [vmem:[#allocation8 + $0x1c0] ss:$16 sps:$4 sm:$0xff]   ;;  %v4102_v38 = vld [vmem:[#allocation8 + $0x1c8] ss:$16 sps:$4 sm:$0xff]   ;;  %v4107_v39 = vld [vmem:[#allocation8 + $0x1e4] ss:$16 sps:$4 sm:$0xff]  }
  0x66   :  { %3562 = vmatmul.mubr.msk.bf16.vlgmr.msra.gmra.mrb[8].mxu0 %vm714_vm2, %v4020_v44  ;;  %v4110_v40 = vld [vmem:[#allocation8 + $0x1ec] ss:$16 sps:$4 sm:$0xff]   ;;  %v4105_v41 = vld [vmem:[#allocation8 + $0x1e0] ss:$16 sps:$4 sm:$0xff]   ;;  %v4108_v42 = vld [vmem:[#allocation8 + $0x1e8] ss:$16 sps:$4 sm:$0xff]  }
  0x67   :  { %2098 = vmatpush1.bf16.msra.mxu0 %v4014_v45  ;;  %v4113_v43 = vld [vmem:[#allocation8 + $0x204] ss:$16 sps:$4 sm:$0xff]   ;;  %v116_v45 = vlaneseq }
  0x68   :  { %3564 = vmatmul.mubr.msk.bf16.vlgmr.msra.gmra.mrb[8].mxu1 %vm714_vm2, %v4020_v44  ;;  %2099 = vmatprep.subr.bf16.mxu0 %v4023_v46  ;;  %v4116_v44 = vld [vmem:[#allocation8 + $0x20c] ss:$16 sps:$4 sm:$0xff]  }
  0x69   :  { %2270 = vmatpush1.bf16.msra.mxu1 %v4017_v47  ;;  %v4858_v46 = vshrl.u32 %v116_v45, 7  ;;  %v4123_v45 = vld [vmem:[#allocation8 + $0x240] ss:$16 sps:$4 sm:$0xff]  }
  0x6a   :  { %2271 = vmatprep.subr.bf16.mxu1 %v4026_v48  ;;  %v4863_v48 = vld [vmem:[#allocation6] sm:$0xff] }
  0x6b   :  { %2100 = vmatpush1.bf16.msra.mxu0 %v4021_v49  ;;  %v4861_v47 = vsub.s32 0, %v4858_v46  ;;  %v4866_v49 = vsub.s32 1, %v4858_v46 }
  0x6c   :  { %2101 = vmatprep.subr.bf16.mxu0 %v4029_v50  ;;  %v4869_v50 = vsub.s32 2, %v4858_v46 }
  0x6d   :  { %2272 = vmatpush1.bf16.msra.mxu1 %v4024_v51  ;;  %v4872_v51 = vsub.s32 3, %v4858_v46 }
  0x6e   :  { %2273 = vmatprep.subr.bf16.mxu1 %v4032_v52  ;;  %v119_v52 = vrot.slane %v4863_v48, %v4861_v47 }
  0x6f   :  { %2102 = vmatpush1.bf16.msra.mxu0 %v4027_v53  ;;  %v123_v53 = vrot.slane %v4863_v48, %v4866_v49 }
  0x70   :  { %2103 = vmatprep.subr.bf16.mxu0 %v4035_v54  ;;  %v127_v54 = vrot.slane %v4863_v48, %v4869_v50 }
  0x71   :  { %2274 = vmatpush1.bf16.msra.mxu1 %v4030_v55 }
  0x72   :  { %2275 = vmatprep.subr.bf16.mxu1 %v4038_v56  ;;  %v131_v56 = vrot.slane %v4863_v48, %v4872_v51 }
  0x73   :  { %2104 = vmatpush1.bf16.msra.mxu0 %v4033_v57  ;;  %v134_v57 = vsub.s32 4, %v4858_v46 }
  0x74   :  { %2105 = vmatprep.subr.bf16.mxu0 %v4041_v58  ;;  %v138_v58 = vsub.s32 5, %v4858_v46 }
  0x75   :  { %2276 = vmatpush1.bf16.msra.mxu1 %v4036_v59 }
  0x76   :  { %2277 = vmatprep.subr.bf16.mxu1 %v4044_v60 }
  0x77   :  { %2106 = vmatpush1.bf16.msra.mxu0 %v4039_v61 }
  0x78   :  { %2107 = vmatprep.subr.bf16.mxu0 %v4047_v62 }
  0x79   :  { %2278 = vmatpush1.bf16.msra.mxu1 %v4042_v63 }
  0x7a   :  { %2279 = vmatprep.subr.bf16.mxu1 %v4050_v1 }
  0x7b   :  { %2108 = vmatpush1.bf16.msra.mxu0 %v4045_v0 }
  0x7c   :  { %2109 = vmatprep.subr.bf16.mxu0 %v4053_v3 }
  0x7d   :  { %2280 = vmatpush1.bf16.msra.mxu1 %v4048_v2 }
  0x7e   :  { %2281 = vmatprep.subr.bf16.mxu1 %v4056_v4 }
  0x7f   :  { %2110 = vmatpush1.bf16.msra.mxu0 %v4051_v5 }
  0x80   :  { %2111 = vmatprep.subr.bf16.mxu0 %v4059_v6 }
  0x81   :  { %2282 = vmatpush1.bf16.msra.mxu1 %v4054_v7  ;;  %v135_v7 = vrot.slane %v4863_v48, %v134_v57 }
  0x82   :  { %2283 = vmatprep.subr.bf16.mxu1 %v4062_v8  ;;  %v139_v8 = vrot.slane %v4863_v48, %v138_v58  ;;  %v4132_v58 = vld [vmem:[#allocation8 + $0x268] ss:$16 sps:$4 sm:$0xff]  }
  0x83   :  { %2112 = vmatpush1.bf16.msra.mxu0 %v4057_v9 }
  0x84   :  { %2113 = vmatprep.subr.bf16.mxu0 %v4065_v10 }
  0x85   :  { %2284 = vmatpush1.bf16.msra.mxu1 %v4060_v11 }
  0x86   :  { %2285 = vmatprep.subr.bf16.mxu1 %v4068_v12 }
  0x87   :  { %2114 = vmatpush1.bf16.msra.mxu0 %v4063_v13 }
  0x88   :  { %2115 = vmatprep.subr.bf16.mxu0 %v4071_v14 }
  0x89   :  { %2286 = vmatpush1.bf16.msra.mxu1 %v4066_v15 }
  0x8a   :  { %2287 = vmatprep.subr.bf16.mxu1 %v4074_v16 }
  0x8b   :  { %2116 = vmatpush1.bf16.msra.mxu0 %v4069_v17 }
  0x8c   :  { %2117 = vmatprep.subr.bf16.mxu0 %v4077_v18 }
  0x8d   :  { %2288 = vmatpush1.bf16.msra.mxu1 %v4072_v19 }
  0x8e   :  { %2289 = vmatprep.subr.bf16.mxu1 %v4080_v20 }
  0x8f   :  { %2118 = vmatpush1.bf16.msra.mxu0 %v4075_v21  ;;  %v4111_v21 = vld [vmem:[#allocation8 + $0x200] ss:$16 sps:$4 sm:$0xff]  }
  0x90   :  { %2119 = vmatprep.subr.bf16.mxu0 %v4083_v22  ;;  %v4114_v22 = vld [vmem:[#allocation8 + $0x208] ss:$16 sps:$4 sm:$0xff]  }
  0x91   :  { %2290 = vmatpush1.bf16.msra.mxu1 %v4078_v23 }
  0x92   :  { %2291 = vmatprep.subr.bf16.mxu1 %v4086_v24 }
  0x93   :  { %2120 = vmatpush1.bf16.msra.mxu0 %v4081_v25  ;;  %v4119_v25 = vld [vmem:[#allocation8 + $0x224] ss:$16 sps:$4 sm:$0xff]  }
  0x94   :  { %2121 = vmatprep.subr.bf16.mxu0 %v4089_v26  ;;  %v4122_v26 = vld [vmem:[#allocation8 + $0x22c] ss:$16 sps:$4 sm:$0xff]  }
  0x95   :  { %2292 = vmatpush1.bf16.msra.mxu1 %v4084_v27 }
  0x96   :  { %2293 = vmatprep.subr.bf16.mxu1 %v4092_v28 }
  0x97   :  { %2122 = vmatpush1.bf16.msra.mxu0 %v4087_v29 }
  0x98   :  { %2123 = vmatprep.subr.bf16.mxu0 %v4095_v30 }
  0x99   :  { %2294 = vmatpush1.bf16.msra.mxu1 %v4090_v31 }
  0x9a   :  { %2295 = vmatprep.subr.bf16.mxu1 %v4098_v32 }
  0x9b   :  { %2124 = vmatpush1.bf16.msra.mxu0 %v4093_v33 }
  0x9c   :  { %2125 = vmatprep.subr.bf16.mxu0 %v4101_v35 }
  0x9d   :  { %2296 = vmatpush1.bf16.msra.mxu1 %v4096_v34 }
  0x9e   :  { %2297 = vmatprep.subr.bf16.mxu1 %v4104_v36  ;;  %v4117_v36 = vld [vmem:[#allocation8 + $0x220] ss:$16 sps:$4 sm:$0xff]  }
  0x9f   :  { %2126 = vmatpush1.bf16.msra.mxu0 %v4099_v37  ;;  %v4120_v37 = vld [vmem:[#allocation8 + $0x228] ss:$16 sps:$4 sm:$0xff]  }
  0xa0   :  { %2127 = vmatprep.subr.bf16.mxu0 %v4107_v39 }
  0xa1   :  { %2298 = vmatpush1.bf16.msra.mxu1 %v4102_v38 }
  0xa2   :  { %2299 = vmatprep.subr.bf16.mxu1 %v4110_v40  ;;  %v4125_v40 = vld [vmem:[#allocation8 + $0x244] ss:$16 sps:$4 sm:$0xff]  }
  0xa3   :  { %2128 = vmatpush1.bf16.msra.mxu0 %v4105_v41  ;;  %v4128_v41 = vld [vmem:[#allocation8 + $0x24c] ss:$16 sps:$4 sm:$0xff]  }
  0xa4   :  { %2140 = vmatprep.subr.bf16.mxu0 %v4113_v43 }
  0xa5   :  { %2300 = vmatpush1.bf16.msra.mxu1 %v4108_v42 }
  0xa6   :  { %2312 = vmatprep.subr.bf16.mxu1 %v4116_v44 }
 0x129   :  { %v279_v55 = vpop.f32.mrb[0].mxu0  ;;  %v322_v63 = vpop.f32.mrb[0].mxu1 }
 0x12a   :  { %v280_v59 = vadd.f32 %v279_v55, %v119_v52  ;;  %v281_v60 = vpop.f32.mrb[1].mxu0  ;;  %v323_v2 = vadd.f32 %v322_v63, %v127_v54  ;;  %v324_v3 = vpop.f32.mrb[1].mxu1  ;;  %v4134_v55 = vld [vmem:[#allocation8 + $0x26c] ss:$16 sps:$4 sm:$0xff]   ;;  %v4143_v63 = vld [vmem:[#allocation8 + $0x2a4] ss:$16 sps:$4 sm:$0xff]  }
 0x12b   :  { %v282_v61 = vadd.f32 %v281_v60, %v123_v53  ;;  %v283_v62 = vpop.f32.mrb[2].mxu0  ;;  %v325_v5 = vadd.f32 %v324_v3, %v131_v56  ;;  %v326_v6 = vpop.f32.mrb[2].mxu1  ;;  %v4140_v60 = vld [vmem:[#allocation8 + $0x28c] ss:$16 sps:$4 sm:$0xff]   ;;  %v4149_v3 = vld [vmem:[#allocation8 + $0x2c4] ss:$16 sps:$4 sm:$0xff]  }
 0x12c   :  { %v284_v0 = vadd.f32 %v283_v62, %v119_v52  ;;  %v285_v1 = vpop.f32.mrb[3].mxu0  ;;  %v417_v9 = vmax.f32 %v280_v59, 0.0  ;;  %v419_v11 = vmax.f32 %v323_v2, 0.0  ;;  %v327_v12 = vadd.f32 %v326_v6, %v127_v54  ;;  %v328_v13 = vpop.f32.mrb[3].mxu1  ;;  %v4126_v52 = vld [vmem:[#allocation8 + $0x248] ss:$16 sps:$4 sm:$0xff]  }
 0x12d   :  { %v286_v4 = vadd.f32 %v285_v1, %v123_v53  ;;  %v418_v14 = vmax.f32 %v282_v61, 0.0  ;;  %v420_v16 = vmax.f32 %v325_v5, 0.0  ;;  %v329_v17 = vadd.f32 %v328_v13, %v131_v56  ;;  %v4131_v54 = vld [vmem:[#allocation8 + $0x264] ss:$16 sps:$4 sm:$0xff]   ;;  %v4129_v56 = vld [vmem:[#allocation8 + $0x260] ss:$16 sps:$4 sm:$0xff]  }
 0x12e   :  { %v425_v10 = vmax.f32 %v284_v0, 0.0  ;;  %v427_v19 = vmax.f32 %v327_v12, 0.0  ;;  %v4137_v59 = vld [vmem:[#allocation8 + $0x284] ss:$16 sps:$4 sm:$0xff]   ;;  %v4135_v61 = vld [vmem:[#allocation8 + $0x280] ss:$16 sps:$4 sm:$0xff]  }
 0x12f   :  { %v426_v15 = vmax.f32 %v286_v4, 0.0  ;;  %v428_v23 = vmax.f32 %v329_v17, 0.0  ;;  %v4138_v62 = vld [vmem:[#allocation8 + $0x288] ss:$16 sps:$4 sm:$0xff]   ;;  %v4146_v0 = vld [vmem:[#allocation8 + $0x2ac] ss:$16 sps:$4 sm:$0xff]  }
 0x130   :  { %v433_v18 = vpack.c.bf16 %v425_v10, %v417_v9  ;;  %v4888_v27 = vpack.c.bf16 %v427_v19, %v419_v11  ;;  %v4141_v1 = vld [vmem:[#allocation8 + $0x2a0] ss:$16 sps:$4 sm:$0xff]   ;;  %v4144_v2 = vld [vmem:[#allocation8 + $0x2a8] ss:$16 sps:$4 sm:$0xff]   ;;  %v4152_v4 = vld [vmem:[#allocation8 + $0x2cc] ss:$16 sps:$4 sm:$0xff]  }
 0x131   :  { %v434_v20 = vpack.c.bf16 %v426_v15, %v418_v14  ;;  %v365_v24 = vpop.f32.mrb[4].mxu0  ;;  %v436_v30 = vpack.c.bf16 %v428_v23, %v420_v16  ;;  %v4147_v5 = vld [vmem:[#allocation8 + $0x2c0] ss:$16 sps:$4 sm:$0xff]   ;;  %v4150_v6 = vld [vmem:[#allocation8 + $0x2c8] ss:$16 sps:$4 sm:$0xff]  }
 0x132   :  { %v366_v28 = vadd.f32 %v365_v24, %v135_v7  ;;  %v367_v29 = vpop.f32.mrb[5].mxu0  ;;  %v4153_v9 = vld [vmem:[#allocation8 + $0x2e0] ss:$16 sps:$4 sm:$0xff]   ;;  %v4156_v10 = vld [vmem:[#allocation8 + $0x2e8] ss:$16 sps:$4 sm:$0xff]  }
 0x133   :  { %2129 = vmatprep.mubr.bf16.mxu0 %v434_v20  ;;  %2301 = vmatprep.mubr.bf16.mxu1 %v434_v20  ;;  %v368_v31 = vadd.f32 %v367_v29, %v139_v8  ;;  %v369_v32 = vpop.f32.mrb[6].mxu0  ;;  %v4161_v11 = vld [vmem:[#allocation8 + $0x304] ss:$16 sps:$4 sm:$0xff]   ;;  %v4164_v12 = vld [vmem:[#allocation8 + $0x30c] ss:$16 sps:$4 sm:$0xff]  }
 0x134   :  { %2130 = vmatmul.mubr.bf16.vlgmr.msra.gmra.mrb[8].mxu0 %v433_v18  ;;  %2302 = vmatmul.mubr.bf16.vlgmr.msra.gmra.mrb[8].mxu1 %v433_v18  ;;  %v421_v33 = vmax.f32 %v366_v28, 0.0  ;;  %v370_v34 = vadd.f32 %v369_v32, %v135_v7  ;;  %v371_v35 = vpop.f32.mrb[7].mxu0  ;;  %v4155_v7 = vld [vmem:[#allocation8 + $0x2e4] ss:$16 sps:$4 sm:$0xff]   ;;  %v4159_v13 = vld [vmem:[#allocation8 + $0x300] ss:$16 sps:$4 sm:$0xff]  }
 0x135   :  { %2141 = vmatpush1.bf16.msra.mxu0 %v4111_v21  ;;  %2313 = vmatpush1.bf16.msra.mxu1 %v4114_v22  ;;  %v422_v38 = vmax.f32 %v368_v31, 0.0  ;;  %v372_v39 = vadd.f32 %v371_v35, %v139_v8  ;;  %v4158_v8 = vld [vmem:[#allocation8 + $0x2ec] ss:$16 sps:$4 sm:$0xff]   ;;  %v4162_v14 = vld [vmem:[#allocation8 + $0x308] ss:$16 sps:$4 sm:$0xff]  }
 0x136   :  { %2142 = vmatprep.subr.bf16.mxu0 %v4119_v25  ;;  %2314 = vmatprep.subr.bf16.mxu1 %v4122_v26  ;;  %v429_v42 = vmax.f32 %v370_v34, 0.0  ;;  %v4167_v15 = vld [vmem:[#allocation8 + $0x324] ss:$16 sps:$4 sm:$0xff]   ;;  %v4170_v16 = vld [vmem:[#allocation8 + $0x32c] ss:$16 sps:$4 sm:$0xff]  }
 0x137   :  { %2172 = vmatprep.mubr.bf16.mxu0 %v436_v30  ;;  %2344 = vmatprep.mubr.bf16.mxu1 %v436_v30  ;;  %v430_v43 = vmax.f32 %v372_v39, 0.0  ;;  %v4165_v17 = vld [vmem:[#allocation8 + $0x320] ss:$16 sps:$4 sm:$0xff]   ;;  %v4168_v18 = vld [vmem:[#allocation8 + $0x328] ss:$16 sps:$4 sm:$0xff]  }
 0x138   :  { %v4890_v44 = vpack.c.bf16 %v429_v42, %v421_v33  ;;  %v4173_v19 = vld [vmem:[#allocation8 + $0x344] ss:$16 sps:$4 sm:$0xff]   ;;  %v4176_v20 = vld [vmem:[#allocation8 + $0x34c] ss:$16 sps:$4 sm:$0xff]   ;;  %v4171_v21 = vld [vmem:[#allocation8 + $0x340] ss:$16 sps:$4 sm:$0xff]  }
 0x139   :  { %2143 = vmatpush1.bf16.msra.mxu0 %v4117_v36  ;;  %2315 = vmatpush1.bf16.msra.mxu1 %v4120_v37  ;;  %v4892_v53 = vpack.c.bf16 %v430_v43, %v422_v38  ;;  %v4174_v22 = vld [vmem:[#allocation8 + $0x348] ss:$16 sps:$4 sm:$0xff]   ;;  %v4179_v23 = vld [vmem:[#allocation8 + $0x364] ss:$16 sps:$4 sm:$0xff]   ;;  %v4182_v24 = vld [vmem:[#allocation8 + $0x36c] ss:$16 sps:$4 sm:$0xff]  }
 0x13a   :  { %2144 = vmatprep.subr.bf16.mxu0 %v4125_v40  ;;  %2316 = vmatprep.subr.bf16.mxu1 %v4128_v41  ;;  %v4177_v25 = vld [vmem:[#allocation8 + $0x360] ss:$16 sps:$4 sm:$0xff]   ;;  %v4180_v26 = vld [vmem:[#allocation8 + $0x368] ss:$16 sps:$4 sm:$0xff]   ;;  %v4185_v28 = vld [vmem:[#allocation8 + $0x384] ss:$16 sps:$4 sm:$0xff]  }
 0x13b   :  { %v4188_v29 = vld [vmem:[#allocation8 + $0x38c] ss:$16 sps:$4 sm:$0xff]   ;;  %v4183_v30 = vld [vmem:[#allocation8 + $0x380] ss:$16 sps:$4 sm:$0xff]   ;;  %v4186_v31 = vld [vmem:[#allocation8 + $0x388] ss:$16 sps:$4 sm:$0xff]  }
 0x13c   :  { %v4191_v32 = vld [vmem:[#allocation8 + $0x3a4] ss:$16 sps:$4 sm:$0xff]   ;;  %v4194_v33 = vld [vmem:[#allocation8 + $0x3ac] ss:$16 sps:$4 sm:$0xff]   ;;  %v4189_v34 = vld [vmem:[#allocation8 + $0x3a0] ss:$16 sps:$4 sm:$0xff]  }
 0x13d   :  { %2145 = vmatpush1.bf16.msra.mxu0 %v4123_v45  ;;  %2317 = vmatpush1.bf16.msra.mxu1 %v4126_v52  ;;  %v4192_v35 = vld [vmem:[#allocation8 + $0x3a8] ss:$16 sps:$4 sm:$0xff]   ;;  %v142_v36 = vsub.s32 6, %v4858_v46  ;;  %v408_v37 = vpop.f32.mrb[4].mxu1  ;;  %v146_v38 = vsub.s32 7, %v4858_v46 }
 0x13e   :  { %2146 = vmatprep.subr.bf16.mxu0 %v4131_v54  ;;  %2318 = vmatprep.subr.bf16.mxu1 %v4134_v55  ;;  %v4197_v39 = vld [vmem:[#allocation8 + $0x3c4] ss:$16 sps:$4 sm:$0xff]   ;;  %v4200_v40 = vld [vmem:[#allocation8 + $0x3cc] ss:$16 sps:$4 sm:$0xff]   ;;  %v410_v41 = vpop.f32.mrb[5].mxu1 }
 0x13f   :  { %v143_v42 = vrot.slane %v4863_v48, %v142_v36  ;;  %v147_v43 = vrot.slane %v4863_v48, %v146_v38  ;;  %v412_v45 = vpop.f32.mrb[6].mxu1  ;;  %v4195_v54 = vld [vmem:[#allocation8 + $0x3c0] ss:$16 sps:$4 sm:$0xff]   ;;  %v4198_v55 = vld [vmem:[#allocation8 + $0x3c8] ss:$16 sps:$4 sm:$0xff]  }
 0x140   :  { %v414_v52 = vpop.f32.mrb[7].mxu1  ;;  %v4201_v48 = vld [vmem:[#allocation8 + $0x3e0] ss:$16 sps:$4 sm:$0xff]   ;;  %v4257_v38 = vld [vmem:[#allocation8 + $0x504] ss:$16 sps:$4 sm:$0xff]  }
 0x141   :  { %2147 = vmatpush1.bf16.msra.mxu0 %v4129_v56  ;;  %2319 = vmatpush1.bf16.msra.mxu1 %v4132_v58  ;;  %v409_v56 = vadd.f32 %v408_v37, %v143_v42  ;;  %v411_v58 = vadd.f32 %v410_v41, %v147_v43  ;;  %v4252_v37 = vld [vmem:[#allocation8 + $0x4e8] ss:$16 sps:$4 sm:$0xff]  }
 0x142   :  { %2148 = vmatprep.subr.bf16.mxu0 %v4137_v59  ;;  %2320 = vmatprep.subr.bf16.mxu1 %v4140_v60  ;;  %v413_v59 = vadd.f32 %v412_v45, %v143_v42  ;;  %v4203_v60 = vld [vmem:[#allocation8 + $0x3e4] ss:$16 sps:$4 sm:$0xff]   ;;  %v4258_v41 = vld [vmem:[#allocation8 + $0x508] ss:$16 sps:$4 sm:$0xff]   ;;  %v4261_v45 = vld [vmem:[#allocation8 + $0x520] ss:$16 sps:$4 sm:$0xff]  }
 0x143   :  { %v4263_v42 = vld [vmem:[#allocation8 + $0x524] ss:$16 sps:$4 sm:$0xff]  }
 0x145   :  { %2149 = vmatpush1.bf16.msra.mxu0 %v4135_v61  ;;  %2321 = vmatpush1.bf16.msra.mxu1 %v4138_v62  ;;  %v4206_v61 = vld [vmem:[#allocation8 + $0x3ec] ss:$16 sps:$4 sm:$0xff]   ;;  %v415_v62 = vadd.f32 %v414_v52, %v147_v43  ;;  %v4264_v52 = vld [vmem:[#allocation8 + $0x528] ss:$16 sps:$4 sm:$0xff]  }
 0x146   :  { %2150 = vmatprep.subr.bf16.mxu0 %v4143_v63  ;;  %2322 = vmatprep.subr.bf16.mxu1 %v4146_v0  ;;  %v423_v63 = vmax.f32 %v409_v56, 0.0  ;;  %v424_v0 = vmax.f32 %v411_v58, 0.0  ;;  %v4266_v43 = vld [vmem:[#allocation8 + $0x52c] ss:$16 sps:$4 sm:$0xff]   ;;  %v4267_v56 = vld [vmem:[#allocation8 + $0x540] ss:$16 sps:$4 sm:$0xff]  }
 0x147   :  { %v4270_v58 = vld [vmem:[#allocation8 + $0x548] ss:$16 sps:$4 sm:$0xff]  }
 0x149   :  { %2151 = vmatpush1.bf16.msra.mxu0 %v4141_v1  ;;  %2323 = vmatpush1.bf16.msra.mxu1 %v4144_v2  ;;  %v431_v1 = vmax.f32 %v413_v59, 0.0  ;;  %v432_v2 = vmax.f32 %v415_v62, 0.0  ;;  %v4275_v59 = vld [vmem:[#allocation8 + $0x564] ss:$16 sps:$4 sm:$0xff]   ;;  %v4276_v62 = vld [vmem:[#allocation8 + $0x568] ss:$16 sps:$4 sm:$0xff]  }
 0x14a   :  { %2152 = vmatprep.subr.bf16.mxu0 %v4149_v3  ;;  %2324 = vmatprep.subr.bf16.mxu1 %v4152_v4  ;;  %v4204_v3 = vld [vmem:[#allocation8 + $0x3e8] ss:$16 sps:$4 sm:$0xff]  }
 0x14b   :  { %v4900_v4 = vpack.c.bf16 %v431_v1, %v423_v63  ;;  %v4281_v63 = vld [vmem:[#allocation8 + $0x584] ss:$16 sps:$4 sm:$0xff]   ;;  %v4279_v1 = vld [vmem:[#allocation8 + $0x580] ss:$16 sps:$4 sm:$0xff]  }
 0x14d   :  { %2153 = vmatpush1.bf16.msra.mxu0 %v4147_v5  ;;  %2325 = vmatpush1.bf16.msra.mxu1 %v4150_v6  ;;  %v4209_v5 = vld [vmem:[#allocation8 + $0x404] ss:$16 sps:$4 sm:$0xff]   ;;  %v4212_v6 = vld [vmem:[#allocation8 + $0x40c] ss:$16 sps:$4 sm:$0xff]  }
 0x14e   :  { %2154 = vmatprep.subr.bf16.mxu0 %v4155_v7  ;;  %2326 = vmatprep.subr.bf16.mxu1 %v4158_v8  ;;  %v4902_v7 = vpack.c.bf16 %v432_v2, %v424_v0  ;;  %v4207_v8 = vld [vmem:[#allocation8 + $0x400] ss:$16 sps:$4 sm:$0xff]   ;;  %v4284_v0 = vld [vmem:[#allocation8 + $0x58c] ss:$16 sps:$4 sm:$0xff]   ;;  %v4282_v2 = vld [vmem:[#allocation8 + $0x588] ss:$16 sps:$4 sm:$0xff]  }
 0x151   :  { %2155 = vmatpush1.bf16.msra.mxu0 %v4153_v9  ;;  %2327 = vmatpush1.bf16.msra.mxu1 %v4156_v10  ;;  %v4210_v9 = vld [vmem:[#allocation8 + $0x408] ss:$16 sps:$4 sm:$0xff]   ;;  %v4215_v10 = vld [vmem:[#allocation8 + $0x424] ss:$16 sps:$4 sm:$0xff]  }
 0x152   :  { %2156 = vmatprep.subr.bf16.mxu0 %v4161_v11  ;;  %2328 = vmatprep.subr.bf16.mxu1 %v4164_v12  ;;  %v4218_v11 = vld [vmem:[#allocation8 + $0x42c] ss:$16 sps:$4 sm:$0xff]   ;;  %v4213_v12 = vld [vmem:[#allocation8 + $0x420] ss:$16 sps:$4 sm:$0xff]  }
 0x155   :  { %2157 = vmatpush1.bf16.msra.mxu0 %v4159_v13  ;;  %2329 = vmatpush1.bf16.msra.mxu1 %v4162_v14  ;;  %v4216_v13 = vld [vmem:[#allocation8 + $0x428] ss:$16 sps:$4 sm:$0xff]   ;;  %v4221_v14 = vld [vmem:[#allocation8 + $0x444] ss:$16 sps:$4 sm:$0xff]  }
 0x156   :  { %2158 = vmatprep.subr.bf16.mxu0 %v4167_v15  ;;  %2330 = vmatprep.subr.bf16.mxu1 %v4170_v16  ;;  %v4224_v15 = vld [vmem:[#allocation8 + $0x44c] ss:$16 sps:$4 sm:$0xff]   ;;  %v4219_v16 = vld [vmem:[#allocation8 + $0x440] ss:$16 sps:$4 sm:$0xff]  }
 0x159   :  { %2159 = vmatpush1.bf16.msra.mxu0 %v4165_v17  ;;  %2331 = vmatpush1.bf16.msra.mxu1 %v4168_v18  ;;  %v4222_v17 = vld [vmem:[#allocation8 + $0x448] ss:$16 sps:$4 sm:$0xff]   ;;  %v4227_v18 = vld [vmem:[#allocation8 + $0x464] ss:$16 sps:$4 sm:$0xff]  }
 0x15a   :  { %2160 = vmatprep.subr.bf16.mxu0 %v4173_v19  ;;  %2332 = vmatprep.subr.bf16.mxu1 %v4176_v20  ;;  %v4225_v19 = vld [vmem:[#allocation8 + $0x460] ss:$16 sps:$4 sm:$0xff]   ;;  %v4228_v20 = vld [vmem:[#allocation8 + $0x468] ss:$16 sps:$4 sm:$0xff]  }
 0x15d   :  { %2161 = vmatpush1.bf16.msra.mxu0 %v4171_v21  ;;  %2333 = vmatpush1.bf16.msra.mxu1 %v4174_v22  ;;  %v4233_v21 = vld [vmem:[#allocation8 + $0x484] ss:$16 sps:$4 sm:$0xff]   ;;  %v4236_v22 = vld [vmem:[#allocation8 + $0x48c] ss:$16 sps:$4 sm:$0xff]  }
 0x15e   :  { %2162 = vmatprep.subr.bf16.mxu0 %v4179_v23  ;;  %2334 = vmatprep.subr.bf16.mxu1 %v4182_v24  ;;  %v4231_v23 = vld [vmem:[#allocation8 + $0x480] ss:$16 sps:$4 sm:$0xff]   ;;  %v4239_v24 = vld [vmem:[#allocation8 + $0x4a4] ss:$16 sps:$4 sm:$0xff]  }
 0x161   :  { %2163 = vmatpush1.bf16.msra.mxu0 %v4177_v25  ;;  %2335 = vmatpush1.bf16.msra.mxu1 %v4180_v26  ;;  %v4242_v25 = vld [vmem:[#allocation8 + $0x4ac] ss:$16 sps:$4 sm:$0xff]   ;;  %v4237_v26 = vld [vmem:[#allocation8 + $0x4a0] ss:$16 sps:$4 sm:$0xff]  }
 0x162   :  { %2164 = vmatprep.subr.bf16.mxu0 %v4185_v28  ;;  %2336 = vmatprep.subr.bf16.mxu1 %v4188_v29  ;;  %v4240_v28 = vld [vmem:[#allocation8 + $0x4a8] ss:$16 sps:$4 sm:$0xff]   ;;  %v4245_v29 = vld [vmem:[#allocation8 + $0x4c4] ss:$16 sps:$4 sm:$0xff]  }
 0x165   :  { %2165 = vmatpush1.bf16.msra.mxu0 %v4183_v30  ;;  %2337 = vmatpush1.bf16.msra.mxu1 %v4186_v31  ;;  %v4248_v30 = vld [vmem:[#allocation8 + $0x4cc] ss:$16 sps:$4 sm:$0xff]   ;;  %v4243_v31 = vld [vmem:[#allocation8 + $0x4c0] ss:$16 sps:$4 sm:$0xff]  }
 0x166   :  { %2166 = vmatprep.subr.bf16.mxu0 %v4191_v32  ;;  %2338 = vmatprep.subr.bf16.mxu1 %v4194_v33  ;;  %v4246_v32 = vld [vmem:[#allocation8 + $0x4c8] ss:$16 sps:$4 sm:$0xff]   ;;  %v4251_v33 = vld [vmem:[#allocation8 + $0x4e4] ss:$16 sps:$4 sm:$0xff]  }
 0x169   :  { %2167 = vmatpush1.bf16.msra.mxu0 %v4189_v34  ;;  %2339 = vmatpush1.bf16.msra.mxu1 %v4192_v35  ;;  %v4254_v34 = vld [vmem:[#allocation8 + $0x4ec] ss:$16 sps:$4 sm:$0xff]   ;;  %v4249_v35 = vld [vmem:[#allocation8 + $0x4e0] ss:$16 sps:$4 sm:$0xff]  }
 0x16a   :  { %2168 = vmatprep.subr.bf16.mxu0 %v4197_v39  ;;  %2340 = vmatprep.subr.bf16.mxu1 %v4200_v40  ;;  %v4260_v39 = vld [vmem:[#allocation8 + $0x50c] ss:$16 sps:$4 sm:$0xff]   ;;  %v4255_v40 = vld [vmem:[#allocation8 + $0x500] ss:$16 sps:$4 sm:$0xff]  }
 0x16d   :  { %2169 = vmatpush1.bf16.msra.mxu0 %v4195_v54  ;;  %2341 = vmatpush1.bf16.msra.mxu1 %v4198_v55  ;;  %v4269_v54 = vld [vmem:[#allocation8 + $0x544] ss:$16 sps:$4 sm:$0xff]   ;;  %v4272_v55 = vld [vmem:[#allocation8 + $0x54c] ss:$16 sps:$4 sm:$0xff]  }
 0x16e   :  { %2170 = vmatprep.subr.bf16.mxu0 %v4203_v60  ;;  %2342 = vmatprep.subr.bf16.mxu1 %v4206_v61  ;;  %v4278_v60 = vld [vmem:[#allocation8 + $0x56c] ss:$16 sps:$4 sm:$0xff]   ;;  %v4273_v61 = vld [vmem:[#allocation8 + $0x560] ss:$16 sps:$4 sm:$0xff]  }
 0x171   :  { %2171 = vmatpush1.bf16.msra.mxu0 %v4201_v48  ;;  %2343 = vmatpush1.bf16.msra.mxu1 %v4204_v3  ;;  %v4287_v48 = vld [vmem:[#allocation8 + $0x5a4] ss:$16 sps:$4 sm:$0xff]   ;;  %v4290_v3 = vld [vmem:[#allocation8 + $0x5ac] ss:$16 sps:$4 sm:$0xff]  }
 0x172   :  { %2183 = vmatprep.subr.bf16.mxu0 %v4209_v5  ;;  %2355 = vmatprep.subr.bf16.mxu1 %v4212_v6  ;;  %v4285_v5 = vld [vmem:[#allocation8 + $0x5a0] ss:$16 sps:$4 sm:$0xff]   ;;  %v4288_v6 = vld [vmem:[#allocation8 + $0x5a8] ss:$16 sps:$4 sm:$0xff]  }
 0x174   :  { %2173 = vmatmul.mubr.bf16.vlgmr.msra.gmra.mrb[8].mxu0 %v4888_v27  ;;  %2345 = vmatmul.mubr.bf16.vlgmr.msra.gmra.mrb[8].mxu1 %v4888_v27  ;;  %v4230_v27 = vld [vmem:[#allocation8 + $0x46c] ss:$16 sps:$4 sm:$0xff]  }
 0x175   :  { %2184 = vmatpush1.bf16.msra.mxu0 %v4207_v8  ;;  %2356 = vmatpush1.bf16.msra.mxu1 %v4210_v9  ;;  %v4293_v8 = vld [vmem:[#allocation8 + $0x5c4] ss:$16 sps:$4 sm:$0xff]   ;;  %v4296_v9 = vld [vmem:[#allocation8 + $0x5cc] ss:$16 sps:$4 sm:$0xff]  }
 0x176   :  { %2185 = vmatprep.subr.bf16.mxu0 %v4215_v10  ;;  %2357 = vmatprep.subr.bf16.mxu1 %v4218_v11  ;;  %v4291_v10 = vld [vmem:[#allocation8 + $0x5c0] ss:$16 sps:$4 sm:$0xff]   ;;  %v4294_v11 = vld [vmem:[#allocation8 + $0x5c8] ss:$16 sps:$4 sm:$0xff]  }
 0x177   :  { %2215 = vmatprep.mubr.bf16.mxu0 %v4892_v53  ;;  %2387 = vmatprep.mubr.bf16.mxu1 %v4892_v53  ;;  %v4234_v53 = vld [vmem:[#allocation8 + $0x488] ss:$16 sps:$4 sm:$0xff]  }
 0x179   :  { %2186 = vmatpush1.bf16.msra.mxu0 %v4213_v12  ;;  %2358 = vmatpush1.bf16.msra.mxu1 %v4216_v13  ;;  %v4299_v12 = vld [vmem:[#allocation8 + $0x5e4] ss:$16 sps:$4 sm:$0xff]   ;;  %v4302_v13 = vld [vmem:[#allocation8 + $0x5ec] ss:$16 sps:$4 sm:$0xff]  }
 0x17a   :  { %2187 = vmatprep.subr.bf16.mxu0 %v4221_v14  ;;  %2359 = vmatprep.subr.bf16.mxu1 %v4224_v15  ;;  %v4297_v14 = vld [vmem:[#allocation8 + $0x5e0] ss:$16 sps:$4 sm:$0xff]   ;;  %v4300_v15 = vld [vmem:[#allocation8 + $0x5e8] ss:$16 sps:$4 sm:$0xff]  }
 0x17d   :  { %2188 = vmatpush1.bf16.msra.mxu0 %v4219_v16  ;;  %2360 = vmatpush1.bf16.msra.mxu1 %v4222_v17  ;;  %v4305_v16 = vld [vmem:[#allocation8 + $0x604] ss:$16 sps:$4 sm:$0xff]   ;;  %v4308_v17 = vld [vmem:[#allocation8 + $0x60c] ss:$16 sps:$4 sm:$0xff]  }
 0x17e   :  { %2189 = vmatprep.subr.bf16.mxu0 %v4227_v18  ;;  %2361 = vmatprep.subr.bf16.mxu1 %v4230_v27  ;;  %v4303_v18 = vld [vmem:[#allocation8 + $0x600] ss:$16 sps:$4 sm:$0xff]   ;;  %v4306_v27 = vld [vmem:[#allocation8 + $0x608] ss:$16 sps:$4 sm:$0xff]  }
 0x181   :  { %2190 = vmatpush1.bf16.msra.mxu0 %v4225_v19  ;;  %2362 = vmatpush1.bf16.msra.mxu1 %v4228_v20  ;;  %v4311_v19 = vld [vmem:[#allocation8 + $0x624] ss:$16 sps:$4 sm:$0xff]   ;;  %v4314_v20 = vld [vmem:[#allocation8 + $0x62c] ss:$16 sps:$4 sm:$0xff]  }
 0x182   :  { %2191 = vmatprep.subr.bf16.mxu0 %v4233_v21  ;;  %2363 = vmatprep.subr.bf16.mxu1 %v4236_v22  ;;  %v4309_v21 = vld [vmem:[#allocation8 + $0x620] ss:$16 sps:$4 sm:$0xff]   ;;  %v4312_v22 = vld [vmem:[#allocation8 + $0x628] ss:$16 sps:$4 sm:$0xff]  }
 0x185   :  { %2192 = vmatpush1.bf16.msra.mxu0 %v4231_v23  ;;  %2364 = vmatpush1.bf16.msra.mxu1 %v4234_v53  ;;  %v4317_v23 = vld [vmem:[#allocation8 + $0x644] ss:$16 sps:$4 sm:$0xff]   ;;  %v4320_v53 = vld [vmem:[#allocation8 + $0x64c] ss:$16 sps:$4 sm:$0xff]  }
 0x186   :  { %2193 = vmatprep.subr.bf16.mxu0 %v4239_v24  ;;  %2365 = vmatprep.subr.bf16.mxu1 %v4242_v25  ;;  %v4315_v24 = vld [vmem:[#allocation8 + $0x640] ss:$16 sps:$4 sm:$0xff]   ;;  %v4318_v25 = vld [vmem:[#allocation8 + $0x648] ss:$16 sps:$4 sm:$0xff]  }
 0x189   :  { %2194 = vmatpush1.bf16.msra.mxu0 %v4237_v26  ;;  %2366 = vmatpush1.bf16.msra.mxu1 %v4240_v28  ;;  %v4323_v26 = vld [vmem:[#allocation8 + $0x664] ss:$16 sps:$4 sm:$0xff]   ;;  %v4321_v28 = vld [vmem:[#allocation8 + $0x660] ss:$16 sps:$4 sm:$0xff]  }
 0x18a   :  { %2195 = vmatprep.subr.bf16.mxu0 %v4245_v29  ;;  %2367 = vmatprep.subr.bf16.mxu1 %v4248_v30  ;;  %v4324_v29 = vld [vmem:[#allocation8 + $0x668] ss:$16 sps:$4 sm:$0xff]   ;;  %v4329_v30 = vld [vmem:[#allocation8 + $0x684] ss:$16 sps:$4 sm:$0xff]  }
 0x18d   :  { %2196 = vmatpush1.bf16.msra.mxu0 %v4243_v31  ;;  %2368 = vmatpush1.bf16.msra.mxu1 %v4246_v32  ;;  %v4332_v31 = vld [vmem:[#allocation8 + $0x68c] ss:$16 sps:$4 sm:$0xff]   ;;  %v4327_v32 = vld [vmem:[#allocation8 + $0x680] ss:$16 sps:$4 sm:$0xff]  }
 0x18e   :  { %2197 = vmatprep.subr.bf16.mxu0 %v4251_v33  ;;  %2369 = vmatprep.subr.bf16.mxu1 %v4254_v34  ;;  %v4335_v33 = vld [vmem:[#allocation8 + $0x6a4] ss:$16 sps:$4 sm:$0xff]   ;;  %v4338_v34 = vld [vmem:[#allocation8 + $0x6ac] ss:$16 sps:$4 sm:$0xff]  }
 0x191   :  { %2198 = vmatpush1.bf16.msra.mxu0 %v4249_v35  ;;  %2370 = vmatpush1.bf16.msra.mxu1 %v4252_v37  ;;  %v4333_v35 = vld [vmem:[#allocation8 + $0x6a0] ss:$16 sps:$4 sm:$0xff]   ;;  %v4336_v37 = vld [vmem:[#allocation8 + $0x6a8] ss:$16 sps:$4 sm:$0xff]  }
 0x192   :  { %2199 = vmatprep.subr.bf16.mxu0 %v4257_v38  ;;  %2371 = vmatprep.subr.bf16.mxu1 %v4260_v39  ;;  %v4341_v38 = vld [vmem:[#allocation8 + $0x6c4] ss:$16 sps:$4 sm:$0xff]   ;;  %v4344_v39 = vld [vmem:[#allocation8 + $0x6cc] ss:$16 sps:$4 sm:$0xff]  }
 0x195   :  { %2200 = vmatpush1.bf16.msra.mxu0 %v4255_v40  ;;  %2372 = vmatpush1.bf16.msra.mxu1 %v4258_v41  ;;  %v4339_v40 = vld [vmem:[#allocation8 + $0x6c0] ss:$16 sps:$4 sm:$0xff]   ;;  %v4342_v41 = vld [vmem:[#allocation8 + $0x6c8] ss:$16 sps:$4 sm:$0xff]  }
 0x196   :  { %2201 = vmatprep.subr.bf16.mxu0 %v4263_v42  ;;  %2373 = vmatprep.subr.bf16.mxu1 %v4266_v43  ;;  %v4347_v42 = vld [vmem:[#allocation8 + $0x6e4] ss:$16 sps:$4 sm:$0xff]   ;;  %v4350_v43 = vld [vmem:[#allocation8 + $0x6ec] ss:$16 sps:$4 sm:$0xff]  }
 0x199   :  { %2202 = vmatpush1.bf16.msra.mxu0 %v4261_v45  ;;  %2374 = vmatpush1.bf16.msra.mxu1 %v4264_v52  ;;  %v4345_v45 = vld [vmem:[#allocation8 + $0x6e0] ss:$16 sps:$4 sm:$0xff]   ;;  %v4348_v52 = vld [vmem:[#allocation8 + $0x6e8] ss:$16 sps:$4 sm:$0xff]  }
 0x19a   :  { %2203 = vmatprep.subr.bf16.mxu0 %v4269_v54  ;;  %2375 = vmatprep.subr.bf16.mxu1 %v4272_v55  ;;  %v4353_v54 = vld [vmem:[#allocation8 + $0x704] ss:$16 sps:$4 sm:$0xff]   ;;  %v4356_v55 = vld [vmem:[#allocation8 + $0x70c] ss:$16 sps:$4 sm:$0xff]  }
 0x19d   :  { %2204 = vmatpush1.bf16.msra.mxu0 %v4267_v56  ;;  %2376 = vmatpush1.bf16.msra.mxu1 %v4270_v58  ;;  %v4351_v56 = vld [vmem:[#allocation8 + $0x700] ss:$16 sps:$4 sm:$0xff]   ;;  %v4354_v58 = vld [vmem:[#allocation8 + $0x708] ss:$16 sps:$4 sm:$0xff]  }
 0x19e   :  { %2205 = vmatprep.subr.bf16.mxu0 %v4275_v59  ;;  %2377 = vmatprep.subr.bf16.mxu1 %v4278_v60  ;;  %v4359_v59 = vld [vmem:[#allocation8 + $0x724] ss:$16 sps:$4 sm:$0xff]   ;;  %v4362_v60 = vld [vmem:[#allocation8 + $0x72c] ss:$16 sps:$4 sm:$0xff]  }
 0x1a1   :  { %2206 = vmatpush1.bf16.msra.mxu0 %v4273_v61  ;;  %2378 = vmatpush1.bf16.msra.mxu1 %v4276_v62  ;;  %v4357_v61 = vld [vmem:[#allocation8 + $0x720] ss:$16 sps:$4 sm:$0xff]   ;;  %v4360_v62 = vld [vmem:[#allocation8 + $0x728] ss:$16 sps:$4 sm:$0xff]  }
 0x1a2   :  { %2207 = vmatprep.subr.bf16.mxu0 %v4281_v63  ;;  %2379 = vmatprep.subr.bf16.mxu1 %v4284_v0  ;;  %v4365_v63 = vld [vmem:[#allocation8 + $0x744] ss:$16 sps:$4 sm:$0xff]   ;;  %v4368_v0 = vld [vmem:[#allocation8 + $0x74c] ss:$16 sps:$4 sm:$0xff]  }
 0x1a5   :  { %2208 = vmatpush1.bf16.msra.mxu0 %v4279_v1  ;;  %2380 = vmatpush1.bf16.msra.mxu1 %v4282_v2  ;;  %v4363_v1 = vld [vmem:[#allocation8 + $0x740] ss:$16 sps:$4 sm:$0xff]   ;;  %v4366_v2 = vld [vmem:[#allocation8 + $0x748] ss:$16 sps:$4 sm:$0xff]  }
 0x1a6   :  { %2209 = vmatprep.subr.bf16.mxu0 %v4287_v48  ;;  %2381 = vmatprep.subr.bf16.mxu1 %v4290_v3  ;;  %v4371_v48 = vld [vmem:[#allocation8 + $0x764] ss:$16 sps:$4 sm:$0xff]   ;;  %v4374_v3 = vld [vmem:[#allocation8 + $0x76c] ss:$16 sps:$4 sm:$0xff]  }
 0x1a9   :  { %2210 = vmatpush1.bf16.msra.mxu0 %v4285_v5  ;;  %2382 = vmatpush1.bf16.msra.mxu1 %v4288_v6  ;;  %v4369_v5 = vld [vmem:[#allocation8 + $0x760] ss:$16 sps:$4 sm:$0xff]   ;;  %v4372_v6 = vld [vmem:[#allocation8 + $0x768] ss:$16 sps:$4 sm:$0xff]  }
 0x1aa   :  { %2211 = vmatprep.subr.bf16.mxu0 %v4293_v8  ;;  %2383 = vmatprep.subr.bf16.mxu1 %v4296_v9  ;;  %v4377_v8 = vld [vmem:[#allocation8 + $0x784] ss:$16 sps:$4 sm:$0xff]   ;;  %v4380_v9 = vld [vmem:[#allocation8 + $0x78c] ss:$16 sps:$4 sm:$0xff]  }
 0x1ad   :  { %2212 = vmatpush1.bf16.msra.mxu0 %v4291_v10  ;;  %2384 = vmatpush1.bf16.msra.mxu1 %v4294_v11  ;;  %v4375_v10 = vld [vmem:[#allocation8 + $0x780] ss:$16 sps:$4 sm:$0xff]   ;;  %v4378_v11 = vld [vmem:[#allocation8 + $0x788] ss:$16 sps:$4 sm:$0xff]  }
 0x1ae   :  { %2213 = vmatprep.subr.bf16.mxu0 %v4299_v12  ;;  %2385 = vmatprep.subr.bf16.mxu1 %v4302_v13  ;;  %v4383_v12 = vld [vmem:[#allocation8 + $0x7a4] ss:$16 sps:$4 sm:$0xff]   ;;  %v4386_v13 = vld [vmem:[#allocation8 + $0x7ac] ss:$16 sps:$4 sm:$0xff]  }
 0x1b1   :  { %2214 = vmatpush1.bf16.msra.mxu0 %v4297_v14  ;;  %2386 = vmatpush1.bf16.msra.mxu1 %v4300_v15  ;;  %v4381_v14 = vld [vmem:[#allocation8 + $0x7a0] ss:$16 sps:$4 sm:$0xff]   ;;  %v4384_v15 = vld [vmem:[#allocation8 + $0x7a8] ss:$16 sps:$4 sm:$0xff]  }
 0x1b2   :  { %2226 = vmatprep.subr.bf16.mxu0 %v4305_v16  ;;  %2398 = vmatprep.subr.bf16.mxu1 %v4308_v17  ;;  %v4389_v16 = vld [vmem:[#allocation8 + $0x7c4] ss:$16 sps:$4 sm:$0xff]   ;;  %v4392_v17 = vld [vmem:[#allocation8 + $0x7cc] ss:$16 sps:$4 sm:$0xff]  }
 0x1b4   :  { %2216 = vmatmul.mubr.bf16.vlgmr.msra.gmra.mrb[8].mxu0 %v4890_v44  ;;  %2388 = vmatmul.mubr.bf16.vlgmr.msra.gmra.mrb[8].mxu1 %v4890_v44  ;;  %v4326_v44 = vld [vmem:[#allocation8 + $0x66c] ss:$16 sps:$4 sm:$0xff]  }
 0x1b5   :  { %2227 = vmatpush1.bf16.msra.mxu0 %v4303_v18  ;;  %2399 = vmatpush1.bf16.msra.mxu1 %v4306_v27  ;;  %v4387_v18 = vld [vmem:[#allocation8 + $0x7c0] ss:$16 sps:$4 sm:$0xff]   ;;  %v4390_v27 = vld [vmem:[#allocation8 + $0x7c8] ss:$16 sps:$4 sm:$0xff]  }
 0x1b6   :  { %2228 = vmatprep.subr.bf16.mxu0 %v4311_v19  ;;  %2400 = vmatprep.subr.bf16.mxu1 %v4314_v20  ;;  %v4395_v19 = vld [vmem:[#allocation8 + $0x7e4] ss:$16 sps:$4 sm:$0xff]   ;;  %v4398_v20 = vld [vmem:[#allocation8 + $0x7ec] ss:$16 sps:$4 sm:$0xff]  }
 0x1b7   :  { %2258 = vmatprep.mubr.bf16.mxu0 %v4902_v7  ;;  %2430 = vmatprep.mubr.bf16.mxu1 %v4902_v7  ;;  %v4330_v7 = vld [vmem:[#allocation8 + $0x688] ss:$16 sps:$4 sm:$0xff]  }
 0x1b9   :  { %2229 = vmatpush1.bf16.msra.mxu0 %v4309_v21  ;;  %2401 = vmatpush1.bf16.msra.mxu1 %v4312_v22  ;;  %v4393_v21 = vld [vmem:[#allocation8 + $0x7e0] ss:$16 sps:$4 sm:$0xff]   ;;  %v4396_v22 = vld [vmem:[#allocation8 + $0x7e8] ss:$16 sps:$4 sm:$0xff]  }
 0x1ba   :  { %2230 = vmatprep.subr.bf16.mxu0 %v4317_v23  ;;  %2402 = vmatprep.subr.bf16.mxu1 %v4320_v53  ;;  %v4401_v23 = vld [vmem:[#allocation9 + $0x4] ss:$16 sps:$4 sm:$0xff]   ;;  %v4404_v53 = vld [vmem:[#allocation9 + $0xc] ss:$16 sps:$4 sm:$0xff]  }
 0x1bd   :  { %2231 = vmatpush1.bf16.msra.mxu0 %v4315_v24  ;;  %2403 = vmatpush1.bf16.msra.mxu1 %v4318_v25  ;;  %v4399_v24 = vld [vmem:[#allocation9] ss:$16 sps:$4 sm:$0xff]   ;;  %v4402_v25 = vld [vmem:[#allocation9 + $0x8] ss:$16 sps:$4 sm:$0xff]  }
 0x1be   :  { %2232 = vmatprep.subr.bf16.mxu0 %v4323_v26  ;;  %2404 = vmatprep.subr.bf16.mxu1 %v4326_v44  ;;  %v4407_v26 = vld [vmem:[#allocation9 + $0x24] ss:$16 sps:$4 sm:$0xff]   ;;  %v4410_v44 = vld [vmem:[#allocation9 + $0x2c] ss:$16 sps:$4 sm:$0xff]  }
 0x1c1   :  { %2233 = vmatpush1.bf16.msra.mxu0 %v4321_v28  ;;  %2405 = vmatpush1.bf16.msra.mxu1 %v4324_v29  ;;  %v4405_v28 = vld [vmem:[#allocation9 + $0x20] ss:$16 sps:$4 sm:$0xff]   ;;  %v4408_v29 = vld [vmem:[#allocation9 + $0x28] ss:$16 sps:$4 sm:$0xff]  }
 0x1c2   :  { %2234 = vmatprep.subr.bf16.mxu0 %v4329_v30  ;;  %2406 = vmatprep.subr.bf16.mxu1 %v4332_v31  ;;  %v4413_v30 = vld [vmem:[#allocation9 + $0x44] ss:$16 sps:$4 sm:$0xff]   ;;  %v4416_v31 = vld [vmem:[#allocation9 + $0x4c] ss:$16 sps:$4 sm:$0xff]  }
 0x1c5   :  { %2235 = vmatpush1.bf16.msra.mxu0 %v4327_v32  ;;  %2407 = vmatpush1.bf16.msra.mxu1 %v4330_v7  ;;  %v4411_v32 = vld [vmem:[#allocation9 + $0x40] ss:$16 sps:$4 sm:$0xff]   ;;  %v4414_v7 = vld [vmem:[#allocation9 + $0x48] ss:$16 sps:$4 sm:$0xff]  }
 0x1c6   :  { %2236 = vmatprep.subr.bf16.mxu0 %v4335_v33  ;;  %2408 = vmatprep.subr.bf16.mxu1 %v4338_v34  ;;  %v4419_v33 = vld [vmem:[#allocation9 + $0x64] ss:$16 sps:$4 sm:$0xff]   ;;  %v4422_v34 = vld [vmem:[#allocation9 + $0x6c] ss:$16 sps:$4 sm:$0xff]  }
 0x1c9   :  { %2237 = vmatpush1.bf16.msra.mxu0 %v4333_v35  ;;  %2409 = vmatpush1.bf16.msra.mxu1 %v4336_v37  ;;  %v4417_v35 = vld [vmem:[#allocation9 + $0x60] ss:$16 sps:$4 sm:$0xff]   ;;  %v4425_v37 = vld [vmem:[#allocation9 + $0x84] ss:$16 sps:$4 sm:$0xff]  }
 0x1ca   :  { %2238 = vmatprep.subr.bf16.mxu0 %v4341_v38  ;;  %2410 = vmatprep.subr.bf16.mxu1 %v4344_v39  ;;  %v4428_v38 = vld [vmem:[#allocation9 + $0x8c] ss:$16 sps:$4 sm:$0xff]   ;;  %v4423_v39 = vld [vmem:[#allocation9 + $0x80] ss:$16 sps:$4 sm:$0xff]  }
 0x1cd   :  { %2239 = vmatpush1.bf16.msra.mxu0 %v4339_v40  ;;  %2411 = vmatpush1.bf16.msra.mxu1 %v4342_v41  ;;  %v4426_v40 = vld [vmem:[#allocation9 + $0x88] ss:$16 sps:$4 sm:$0xff]   ;;  %v4431_v41 = vld [vmem:[#allocation9 + $0xa4] ss:$16 sps:$4 sm:$0xff]  }
 0x1ce   :  { %2240 = vmatprep.subr.bf16.mxu0 %v4347_v42  ;;  %2412 = vmatprep.subr.bf16.mxu1 %v4350_v43  ;;  %v4434_v42 = vld [vmem:[#allocation9 + $0xac] ss:$16 sps:$4 sm:$0xff]   ;;  %v4429_v43 = vld [vmem:[#allocation9 + $0xa0] ss:$16 sps:$4 sm:$0xff]  }
 0x1d1   :  { %2241 = vmatpush1.bf16.msra.mxu0 %v4345_v45  ;;  %2413 = vmatpush1.bf16.msra.mxu1 %v4348_v52  ;;  %v4432_v45 = vld [vmem:[#allocation9 + $0xa8] ss:$16 sps:$4 sm:$0xff]   ;;  %v4437_v52 = vld [vmem:[#allocation9 + $0xc4] ss:$16 sps:$4 sm:$0xff]  }
 0x1d2   :  { %2242 = vmatprep.subr.bf16.mxu0 %v4353_v54  ;;  %2414 = vmatprep.subr.bf16.mxu1 %v4356_v55  ;;  %v4440_v54 = vld [vmem:[#allocation9 + $0xcc] ss:$16 sps:$4 sm:$0xff]   ;;  %v4435_v55 = vld [vmem:[#allocation9 + $0xc0] ss:$16 sps:$4 sm:$0xff]  }
 0x1d5   :  { %2243 = vmatpush1.bf16.msra.mxu0 %v4351_v56  ;;  %2415 = vmatpush1.bf16.msra.mxu1 %v4354_v58  ;;  %v4438_v56 = vld [vmem:[#allocation9 + $0xc8] ss:$16 sps:$4 sm:$0xff]   ;;  %v4443_v58 = vld [vmem:[#allocation9 + $0xe4] ss:$16 sps:$4 sm:$0xff]  }
 0x1d6   :  { %2244 = vmatprep.subr.bf16.mxu0 %v4359_v59  ;;  %2416 = vmatprep.subr.bf16.mxu1 %v4362_v60  ;;  %v4446_v59 = vld [vmem:[#allocation9 + $0xec] ss:$16 sps:$4 sm:$0xff]   ;;  %v4441_v60 = vld [vmem:[#allocation9 + $0xe0] ss:$16 sps:$4 sm:$0xff]  }
 0x1d9   :  { %2245 = vmatpush1.bf16.msra.mxu0 %v4357_v61  ;;  %2417 = vmatpush1.bf16.msra.mxu1 %v4360_v62  ;;  %v4444_v61 = vld [vmem:[#allocation9 + $0xe8] ss:$16 sps:$4 sm:$0xff]   ;;  %v4449_v62 = vld [vmem:[#allocation9 + $0x104] ss:$16 sps:$4 sm:$0xff]  }
 0x1da   :  { %2246 = vmatprep.subr.bf16.mxu0 %v4365_v63  ;;  %2418 = vmatprep.subr.bf16.mxu1 %v4368_v0  ;;  %v4452_v63 = vld [vmem:[#allocation9 + $0x10c] ss:$16 sps:$4 sm:$0xff]   ;;  %v4447_v0 = vld [vmem:[#allocation9 + $0x100] ss:$16 sps:$4 sm:$0xff]  }
 0x1dd   :  { %2247 = vmatpush1.bf16.msra.mxu0 %v4363_v1  ;;  %2419 = vmatpush1.bf16.msra.mxu1 %v4366_v2  ;;  %v4450_v1 = vld [vmem:[#allocation9 + $0x108] ss:$16 sps:$4 sm:$0xff]   ;;  %v4455_v2 = vld [vmem:[#allocation9 + $0x124] ss:$16 sps:$4 sm:$0xff]  }
 0x1de   :  { %2248 = vmatprep.subr.bf16.mxu0 %v4371_v48  ;;  %2420 = vmatprep.subr.bf16.mxu1 %v4374_v3  ;;  %v4458_v48 = vld [vmem:[#allocation9 + $0x12c] ss:$16 sps:$4 sm:$0xff]   ;;  %v4453_v3 = vld [vmem:[#allocation9 + $0x120] ss:$16 sps:$4 sm:$0xff]  }
 0x1e1   :  { %2249 = vmatpush1.bf16.msra.mxu0 %v4369_v5  ;;  %2421 = vmatpush1.bf16.msra.mxu1 %v4372_v6  ;;  %v4456_v5 = vld [vmem:[#allocation9 + $0x128] ss:$16 sps:$4 sm:$0xff]   ;;  %v4461_v6 = vld [vmem:[#allocation9 + $0x144] ss:$16 sps:$4 sm:$0xff]  }
 0x1e2   :  { %2250 = vmatprep.subr.bf16.mxu0 %v4377_v8  ;;  %2422 = vmatprep.subr.bf16.mxu1 %v4380_v9  ;;  %v4464_v8 = vld [vmem:[#allocation9 + $0x14c] ss:$16 sps:$4 sm:$0xff]   ;;  %v4459_v9 = vld [vmem:[#allocation9 + $0x140] ss:$16 sps:$4 sm:$0xff]  }
 0x1e5   :  { %2251 = vmatpush1.bf16.msra.mxu0 %v4375_v10  ;;  %2423 = vmatpush1.bf16.msra.mxu1 %v4378_v11  ;;  %v4462_v10 = vld [vmem:[#allocation9 + $0x148] ss:$16 sps:$4 sm:$0xff]   ;;  %v4467_v11 = vld [vmem:[#allocation9 + $0x164] ss:$16 sps:$4 sm:$0xff]  }
 0x1e6   :  { %2252 = vmatprep.subr.bf16.mxu0 %v4383_v12  ;;  %2424 = vmatprep.subr.bf16.mxu1 %v4386_v13  ;;  %v4470_v12 = vld [vmem:[#allocation9 + $0x16c] ss:$16 sps:$4 sm:$0xff]   ;;  %v4465_v13 = vld [vmem:[#allocation9 + $0x160] ss:$16 sps:$4 sm:$0xff]  }
 0x1e9   :  { %2253 = vmatpush1.bf16.msra.mxu0 %v4381_v14  ;;  %2425 = vmatpush1.bf16.msra.mxu1 %v4384_v15  ;;  %v4468_v14 = vld [vmem:[#allocation9 + $0x168] ss:$16 sps:$4 sm:$0xff]   ;;  %v4473_v15 = vld [vmem:[#allocation9 + $0x184] ss:$16 sps:$4 sm:$0xff]  }
 0x1ea   :  { %2254 = vmatprep.subr.bf16.mxu0 %v4389_v16  ;;  %2426 = vmatprep.subr.bf16.mxu1 %v4392_v17  ;;  %v4476_v16 = vld [vmem:[#allocation9 + $0x18c] ss:$16 sps:$4 sm:$0xff]   ;;  %v4471_v17 = vld [vmem:[#allocation9 + $0x180] ss:$16 sps:$4 sm:$0xff]  }
 0x1ed   :  { %2255 = vmatpush1.bf16.msra.mxu0 %v4387_v18  ;;  %2427 = vmatpush1.bf16.msra.mxu1 %v4390_v27  ;;  %v4474_v18 = vld [vmem:[#allocation9 + $0x188] ss:$16 sps:$4 sm:$0xff]   ;;  %v4479_v27 = vld [vmem:[#allocation9 + $0x1a4] ss:$16 sps:$4 sm:$0xff]  }
 0x1ee   :  { %2256 = vmatprep.subr.bf16.mxu0 %v4395_v19  ;;  %2428 = vmatprep.subr.bf16.mxu1 %v4398_v20  ;;  %v4482_v19 = vld [vmem:[#allocation9 + $0x1ac] ss:$16 sps:$4 sm:$0xff]   ;;  %v4477_v20 = vld [vmem:[#allocation9 + $0x1a0] ss:$16 sps:$4 sm:$0xff]  }
 0x1f1   :  { %2257 = vmatpush1.bf16.msra.mxu0 %v4393_v21  ;;  %2429 = vmatpush1.bf16.msra.mxu1 %v4396_v22  ;;  %v4480_v21 = vld [vmem:[#allocation9 + $0x1a8] ss:$16 sps:$4 sm:$0xff]   ;;  %v4485_v22 = vld [vmem:[#allocation9 + $0x1c4] ss:$16 sps:$4 sm:$0xff]  }
 0x1f2   :  { %3273 = vmatprep.subr.bf16.mxu0 %v4401_v23  ;;  %3359 = vmatprep.subr.bf16.mxu1 %v4404_v53  ;;  %v4488_v23 = vld [vmem:[#allocation9 + $0x1cc] ss:$16 sps:$4 sm:$0xff]   ;;  %v4483_v53 = vld [vmem:[#allocation9 + $0x1c0] ss:$16 sps:$4 sm:$0xff]  }
 0x1f4   :  { %2259 = vmatmul.mubr.bf16.vlgmr.msra.gmra.mrb[8].mxu0 %v4900_v4  ;;  %2431 = vmatmul.mubr.bf16.vlgmr.msra.gmra.mrb[8].mxu1 %v4900_v4  ;;  %v4420_v4 = vld [vmem:[#allocation9 + $0x68] ss:$16 sps:$4 sm:$0xff]  }
 0x1f5   :  { %3274 = vmatpush1.bf16.msra.mxu0 %v4399_v24  ;;  %3360 = vmatpush1.bf16.msra.mxu1 %v4402_v25  ;;  %v4486_v24 = vld [vmem:[#allocation9 + $0x1c8] ss:$16 sps:$4 sm:$0xff]   ;;  %v4491_v25 = vld [vmem:[#allocation9 + $0x1e4] ss:$16 sps:$4 sm:$0xff]  }
 0x1f6   :  { %3275 = vmatprep.subr.bf16.mxu0 %v4407_v26  ;;  %3361 = vmatprep.subr.bf16.mxu1 %v4410_v44  ;;  %v4494_v26 = vld [vmem:[#allocation9 + $0x1ec] ss:$16 sps:$4 sm:$0xff]   ;;  %v4489_v44 = vld [vmem:[#allocation9 + $0x1e0] ss:$16 sps:$4 sm:$0xff]  }
 0x1f9   :  { %3276 = vmatpush1.bf16.msra.mxu0 %v4405_v28  ;;  %3362 = vmatpush1.bf16.msra.mxu1 %v4408_v29  ;;  %v4492_v28 = vld [vmem:[#allocation9 + $0x1e8] ss:$16 sps:$4 sm:$0xff]   ;;  %v4497_v29 = vld [vmem:[#allocation9 + $0x204] ss:$16 sps:$4 sm:$0xff]  }
 0x1fa   :  { %3277 = vmatprep.subr.bf16.mxu0 %v4413_v30  ;;  %3363 = vmatprep.subr.bf16.mxu1 %v4416_v31  ;;  %v4500_v30 = vld [vmem:[#allocation9 + $0x20c] ss:$16 sps:$4 sm:$0xff]   ;;  %v2441_v31 = vld [vmem:[%s4966_s6] sm:$0xf] }
 0x1fd   :  { %3278 = vmatpush1.bf16.msra.mxu0 %v4411_v32  ;;  %3364 = vmatpush1.bf16.msra.mxu1 %v4414_v7  ;;  %v2446_v32 = vrot.slane %v2441_v31, %v4861_v47  ;;  %v2454_v7 = vrot.slane %v2441_v31, %v4869_v50 }
 0x1fe   :  { %3279 = vmatprep.subr.bf16.mxu0 %v4419_v33  ;;  %3365 = vmatprep.subr.bf16.mxu1 %v4422_v34  ;;  %v2450_v33 = vrot.slane %v2441_v31, %v4866_v49  ;;  %v2458_v34 = vrot.slane %v2441_v31, %v4872_v51  ;;  %v4531_v31 = vld [vmem:[#allocation9 + $0x2c0] ss:$16 sps:$4 sm:$0xff]  }
 0x201   :  { %3280 = vmatpush1.bf16.msra.mxu0 %v4417_v35  ;;  %3366 = vmatpush1.bf16.msra.mxu1 %v4420_v4 }
 0x202   :  { %3281 = vmatprep.subr.bf16.mxu0 %v4425_v37  ;;  %3367 = vmatprep.subr.bf16.mxu1 %v4428_v38 }
 0x205   :  { %3282 = vmatpush1.bf16.msra.mxu0 %v4423_v39  ;;  %3368 = vmatpush1.bf16.msra.mxu1 %v4426_v40 }
 0x206   :  { %3283 = vmatprep.subr.bf16.mxu0 %v4431_v41  ;;  %3369 = vmatprep.subr.bf16.mxu1 %v4434_v42 }
 0x209   :  { %3284 = vmatpush1.bf16.msra.mxu0 %v4429_v43  ;;  %3370 = vmatpush1.bf16.msra.mxu1 %v4432_v45 }
 0x20a   :  { %3285 = vmatprep.subr.bf16.mxu0 %v4437_v52  ;;  %3371 = vmatprep.subr.bf16.mxu1 %v4440_v54 }
 0x20d   :  { %3286 = vmatpush1.bf16.msra.mxu0 %v4435_v55  ;;  %3372 = vmatpush1.bf16.msra.mxu1 %v4438_v56 }
 0x20e   :  { %3287 = vmatprep.subr.bf16.mxu0 %v4443_v58  ;;  %3373 = vmatprep.subr.bf16.mxu1 %v4446_v59 }
 0x211   :  { %3288 = vmatpush1.bf16.msra.mxu0 %v4441_v60  ;;  %3374 = vmatpush1.bf16.msra.mxu1 %v4444_v61 }
 0x212   :  { %3289 = vmatprep.subr.bf16.mxu0 %v4449_v62  ;;  %3375 = vmatprep.subr.bf16.mxu1 %v4452_v63 }
 0x215   :  { %3290 = vmatpush1.bf16.msra.mxu0 %v4447_v0  ;;  %3376 = vmatpush1.bf16.msra.mxu1 %v4450_v1 }
 0x216   :  { %3291 = vmatprep.subr.bf16.mxu0 %v4455_v2  ;;  %3377 = vmatprep.subr.bf16.mxu1 %v4458_v48 }
 0x219   :  { %3292 = vmatpush1.bf16.msra.mxu0 %v4453_v3  ;;  %3378 = vmatpush1.bf16.msra.mxu1 %v4456_v5 }
 0x21a   :  { %3293 = vmatprep.subr.bf16.mxu0 %v4461_v6  ;;  %3379 = vmatprep.subr.bf16.mxu1 %v4464_v8 }
 0x21d   :  { %3294 = vmatpush1.bf16.msra.mxu0 %v4459_v9  ;;  %3380 = vmatpush1.bf16.msra.mxu1 %v4462_v10  ;;  %v4495_v9 = vld [vmem:[#allocation9 + $0x200] ss:$16 sps:$4 sm:$0xff]   ;;  %v4498_v10 = vld [vmem:[#allocation9 + $0x208] ss:$16 sps:$4 sm:$0xff]  }
 0x21e   :  { %3295 = vmatprep.subr.bf16.mxu0 %v4467_v11  ;;  %3381 = vmatprep.subr.bf16.mxu1 %v4470_v12  ;;  %v4503_v11 = vld [vmem:[#allocation9 + $0x224] ss:$16 sps:$4 sm:$0xff]   ;;  %v4506_v12 = vld [vmem:[#allocation9 + $0x22c] ss:$16 sps:$4 sm:$0xff]  }
 0x221   :  { %3296 = vmatpush1.bf16.msra.mxu0 %v4465_v13  ;;  %3382 = vmatpush1.bf16.msra.mxu1 %v4468_v14  ;;  %v4501_v13 = vld [vmem:[#allocation9 + $0x220] ss:$16 sps:$4 sm:$0xff]   ;;  %v4504_v14 = vld [vmem:[#allocation9 + $0x228] ss:$16 sps:$4 sm:$0xff]  }
 0x222   :  { %3297 = vmatprep.subr.bf16.mxu0 %v4473_v15  ;;  %3383 = vmatprep.subr.bf16.mxu1 %v4476_v16  ;;  %v4509_v15 = vld [vmem:[#allocation9 + $0x244] ss:$16 sps:$4 sm:$0xff]   ;;  %v4512_v16 = vld [vmem:[#allocation9 + $0x24c] ss:$16 sps:$4 sm:$0xff]  }
 0x225   :  { %3298 = vmatpush1.bf16.msra.mxu0 %v4471_v17  ;;  %3384 = vmatpush1.bf16.msra.mxu1 %v4474_v18  ;;  %v4507_v17 = vld [vmem:[#allocation9 + $0x240] ss:$16 sps:$4 sm:$0xff]   ;;  %v4510_v18 = vld [vmem:[#allocation9 + $0x248] ss:$16 sps:$4 sm:$0xff]  }
 0x226   :  { %3299 = vmatprep.subr.bf16.mxu0 %v4479_v27  ;;  %3385 = vmatprep.subr.bf16.mxu1 %v4482_v19  ;;  %v4515_v27 = vld [vmem:[#allocation9 + $0x264] ss:$16 sps:$4 sm:$0xff]   ;;  %v4518_v19 = vld [vmem:[#allocation9 + $0x26c] ss:$16 sps:$4 sm:$0xff]  }
 0x229   :  { %3300 = vmatpush1.bf16.msra.mxu0 %v4477_v20  ;;  %3386 = vmatpush1.bf16.msra.mxu1 %v4480_v21  ;;  %v4513_v20 = vld [vmem:[#allocation9 + $0x260] ss:$16 sps:$4 sm:$0xff]   ;;  %v4516_v21 = vld [vmem:[#allocation9 + $0x268] ss:$16 sps:$4 sm:$0xff]  }
 0x22a   :  { %3301 = vmatprep.subr.bf16.mxu0 %v4485_v22  ;;  %3387 = vmatprep.subr.bf16.mxu1 %v4488_v23  ;;  %v4521_v22 = vld [vmem:[#allocation9 + $0x284] ss:$16 sps:$4 sm:$0xff]   ;;  %v4524_v23 = vld [vmem:[#allocation9 + $0x28c] ss:$16 sps:$4 sm:$0xff]  }
 0x22d   :  { %3302 = vmatpush1.bf16.msra.mxu0 %v4483_v53  ;;  %3388 = vmatpush1.bf16.msra.mxu1 %v4486_v24  ;;  %v4519_v53 = vld [vmem:[#allocation9 + $0x280] ss:$16 sps:$4 sm:$0xff]   ;;  %v4522_v24 = vld [vmem:[#allocation9 + $0x288] ss:$16 sps:$4 sm:$0xff]  }
 0x22e   :  { %3303 = vmatprep.subr.bf16.mxu0 %v4491_v25  ;;  %3389 = vmatprep.subr.bf16.mxu1 %v4494_v26  ;;  %v4527_v25 = vld [vmem:[#allocation9 + $0x2a4] ss:$16 sps:$4 sm:$0xff]   ;;  %v4530_v26 = vld [vmem:[#allocation9 + $0x2ac] ss:$16 sps:$4 sm:$0xff]  }
 0x231   :  { %3304 = vmatpush1.bf16.msra.mxu0 %v4489_v44  ;;  %3390 = vmatpush1.bf16.msra.mxu1 %v4492_v28  ;;  %v4525_v44 = vld [vmem:[#allocation9 + $0x2a0] ss:$16 sps:$4 sm:$0xff]   ;;  %v4528_v28 = vld [vmem:[#allocation9 + $0x2a8] ss:$16 sps:$4 sm:$0xff]  }
 0x232   :  { %3316 = vmatprep.subr.bf16.mxu0 %v4497_v29  ;;  %3402 = vmatprep.subr.bf16.mxu1 %v4500_v30  ;;  %v4533_v29 = vld [vmem:[#allocation9 + $0x2c4] ss:$16 sps:$4 sm:$0xff]   ;;  %v4536_v30 = vld [vmem:[#allocation9 + $0x2cc] ss:$16 sps:$4 sm:$0xff]  }
 0x2c7   :  { %v2260_v35 = vpop.f32.mrb[8].mxu0  ;;  %v2432_v4 = vpop.f32.mrb[8].mxu1 }
 0x2c8   :  { %v2463_v37 = vadd.f32 %v2446_v32, %v2260_v35  ;;  %v2465_v38 = vadd.f32 %v2454_v7, %v2432_v4  ;;  %v2262_v39 = vpop.f32.mrb[9].mxu0  ;;  %v2434_v40 = vpop.f32.mrb[9].mxu1  ;;  %v4540_v35 = vld [vmem:[#allocation9 + $0x2e8] ss:$16 sps:$4 sm:$0xff]   ;;  %v4545_v4 = vld [vmem:[#allocation9 + $0x304] ss:$16 sps:$4 sm:$0xff]  }
 0x2c9   :  { %v2464_v41 = vadd.f32 %v2450_v33, %v2262_v39  ;;  %v2466_v42 = vadd.f32 %v2458_v34, %v2434_v40  ;;  %v2264_v43 = vpop.f32.mrb[10].mxu0  ;;  %v2436_v45 = vpop.f32.mrb[10].mxu1  ;;  %v4546_v39 = vld [vmem:[#allocation9 + $0x308] ss:$16 sps:$4 sm:$0xff]   ;;  %v4551_v40 = vld [vmem:[#allocation9 + $0x324] ss:$16 sps:$4 sm:$0xff]  }
 0x2ca   :  { %v2467_v52 = vadd.f32 %v2446_v32, %v2264_v43  ;;  %v2469_v54 = vadd.f32 %v2454_v7, %v2436_v45  ;;  %v2266_v55 = vpop.f32.mrb[11].mxu0  ;;  %v2438_v56 = vpop.f32.mrb[11].mxu1  ;;  %v2471_v60 = vmax.f32 %v2463_v37, 0.0  ;;  %v2473_v61 = vmax.f32 %v2465_v38, 0.0  ;;  %v4534_v32 = vld [vmem:[#allocation9 + $0x2c8] ss:$16 sps:$4 sm:$0xff]  }
 0x2cb   :  { %v2468_v58 = vadd.f32 %v2450_v33, %v2266_v55  ;;  %v2470_v59 = vadd.f32 %v2458_v34, %v2438_v56  ;;  %v2472_v0 = vmax.f32 %v2464_v41, 0.0  ;;  %v2474_v1 = vmax.f32 %v2466_v42, 0.0  ;;  %v4539_v7 = vld [vmem:[#allocation9 + $0x2e4] ss:$16 sps:$4 sm:$0xff]   ;;  %v4542_v33 = vld [vmem:[#allocation9 + $0x2ec] ss:$16 sps:$4 sm:$0xff]  }
 0x2cc   :  { %v2475_v62 = vmax.f32 %v2467_v52, 0.0  ;;  %v2477_v63 = vmax.f32 %v2469_v54, 0.0  ;;  %v4537_v34 = vld [vmem:[#allocation9 + $0x2e0] ss:$16 sps:$4 sm:$0xff]   ;;  %v4548_v37 = vld [vmem:[#allocation9 + $0x30c] ss:$16 sps:$4 sm:$0xff]  }
 0x2cd   :  { %v2476_v2 = vmax.f32 %v2468_v58, 0.0  ;;  %v2478_v48 = vmax.f32 %v2470_v59, 0.0  ;;  %v4543_v38 = vld [vmem:[#allocation9 + $0x300] ss:$16 sps:$4 sm:$0xff]   ;;  %v4554_v41 = vld [vmem:[#allocation9 + $0x32c] ss:$16 sps:$4 sm:$0xff]  }
 0x2ce   :  { %v2479_v3 = vpack.c.bf16 %v2475_v62, %v2471_v60  ;;  %v4921_v5 = vpack.c.bf16 %v2477_v63, %v2473_v61  ;;  %v4549_v42 = vld [vmem:[#allocation9 + $0x320] ss:$16 sps:$4 sm:$0xff]   ;;  %v4552_v43 = vld [vmem:[#allocation9 + $0x328] ss:$16 sps:$4 sm:$0xff]   ;;  %v4557_v45 = vld [vmem:[#allocation9 + $0x344] ss:$16 sps:$4 sm:$0xff]  }
 0x2cf   :  { %v2480_v6 = vpack.c.bf16 %v2476_v2, %v2472_v0  ;;  %v2482_v8 = vpack.c.bf16 %v2478_v48, %v2474_v1  ;;  %v4560_v52 = vld [vmem:[#allocation9 + $0x34c] ss:$16 sps:$4 sm:$0xff]   ;;  %v4555_v54 = vld [vmem:[#allocation9 + $0x340] ss:$16 sps:$4 sm:$0xff]   ;;  %v4558_v55 = vld [vmem:[#allocation9 + $0x348] ss:$16 sps:$4 sm:$0xff]  }
 0x2d0   :  { %v4563_v56 = vld [vmem:[#allocation9 + $0x364] ss:$16 sps:$4 sm:$0xff]   ;;  %v4566_v58 = vld [vmem:[#allocation9 + $0x36c] ss:$16 sps:$4 sm:$0xff]   ;;  %v4561_v59 = vld [vmem:[#allocation9 + $0x360] ss:$16 sps:$4 sm:$0xff]  }
 0x2d1   :  { %3305 = vmatprep.mubr.bf16.mxu0 %v2480_v6  ;;  %3391 = vmatprep.mubr.bf16.mxu1 %v2480_v6  ;;  %v4564_v60 = vld [vmem:[#allocation9 + $0x368] ss:$16 sps:$4 sm:$0xff]   ;;  %v4569_v61 = vld [vmem:[#allocation9 + $0x384] ss:$16 sps:$4 sm:$0xff]   ;;  %v4572_v62 = vld [vmem:[#allocation9 + $0x38c] ss:$16 sps:$4 sm:$0xff]  }
 0x2d2   :  { %3306 = vmatmul.mubr.bf16.vlgmr.msra.gmra.mrb[12].mxu0 %v2479_v3  ;;  %3392 = vmatmul.mubr.bf16.vlgmr.msra.gmra.mrb[12].mxu1 %v2479_v3  ;;  %v4567_v63 = vld [vmem:[#allocation9 + $0x380] ss:$16 sps:$4 sm:$0xff]   ;;  %v4570_v0 = vld [vmem:[#allocation9 + $0x388] ss:$16 sps:$4 sm:$0xff]   ;;  %v4575_v1 = vld [vmem:[#allocation9 + $0x3a4] ss:$16 sps:$4 sm:$0xff]  }
 0x2d3   :  { %3317 = vmatpush1.bf16.msra.mxu0 %v4495_v9  ;;  %3403 = vmatpush1.bf16.msra.mxu1 %v4498_v10  ;;  %v4578_v2 = vld [vmem:[#allocation9 + $0x3ac] ss:$16 sps:$4 sm:$0xff]   ;;  %v4573_v48 = vld [vmem:[#allocation9 + $0x3a0] ss:$16 sps:$4 sm:$0xff]   ;;  %v4576_v3 = vld [vmem:[#allocation9 + $0x3a8] ss:$16 sps:$4 sm:$0xff]  }
 0x2d4   :  { %3348 = vmatprep.mubr.bf16.mxu0 %v2482_v8  ;;  %3434 = vmatprep.mubr.bf16.mxu1 %v2482_v8  ;;  %v4581_v6 = vld [vmem:[#allocation9 + $0x3c4] ss:$16 sps:$4 sm:$0xff]   ;;  %v4584_v8 = vld [vmem:[#allocation9 + $0x3cc] ss:$16 sps:$4 sm:$0xff]   ;;  %v4579_v9 = vld [vmem:[#allocation9 + $0x3c0] ss:$16 sps:$4 sm:$0xff]  }
 0x2d5   :  { %3318 = vmatprep.subr.bf16.mxu0 %v4503_v11  ;;  %3404 = vmatprep.subr.bf16.mxu1 %v4506_v12  ;;  %v4582_v10 = vld [vmem:[#allocation9 + $0x3c8] ss:$16 sps:$4 sm:$0xff]   ;;  %v4587_v11 = vld [vmem:[#allocation9 + $0x3e4] ss:$16 sps:$4 sm:$0xff]   ;;  %v4590_v12 = vld [vmem:[#allocation9 + $0x3ec] ss:$16 sps:$4 sm:$0xff]  }
 0x2d7   :  { %3319 = vmatpush1.bf16.msra.mxu0 %v4501_v13  ;;  %3405 = vmatpush1.bf16.msra.mxu1 %v4504_v14  ;;  %v4585_v13 = vld [vmem:[#allocation9 + $0x3e0] ss:$16 sps:$4 sm:$0xff]   ;;  %v4588_v14 = vld [vmem:[#allocation9 + $0x3e8] ss:$16 sps:$4 sm:$0xff]  }
 0x2d8   :  { %3320 = vmatprep.subr.bf16.mxu0 %v4509_v15  ;;  %3406 = vmatprep.subr.bf16.mxu1 %v4512_v16  ;;  %v3453_v15 = vld [vmem:[%s4969_s9] sm:$0xf] }
 0x2d9   :  { %v3454_v16 = vunpack.c.l.bf16 %v3453_v15 }
 0x2db   :  { %3321 = vmatpush1.bf16.msra.mxu0 %v4507_v17  ;;  %3407 = vmatpush1.bf16.msra.mxu1 %v4510_v18  ;;  %v2611_v17 = vld [vmem:[%s4968_s8] sm:$0xf]  ;;  %v3467_v18 = vrot.slane %v3454_v16, %v134_v57 }
 0x2dc   :  { %3322 = vmatprep.subr.bf16.mxu0 %v4515_v27  ;;  %3408 = vmatprep.subr.bf16.mxu1 %v4518_v19  ;;  %v2616_v27 = vrot.slane %v2611_v17, %v4861_v47  ;;  %v3459_v19 = vrot.slane %v3454_v16, %v4861_v47 }
 0x2de   :  { %v3479_v57 = vrot.slane %v3459_v19, %v4861_v47 }
 0x2df   :  { %3323 = vmatpush1.bf16.msra.mxu0 %v4513_v20  ;;  %3409 = vmatpush1.bf16.msra.mxu1 %v4516_v21  ;;  %v2624_v20 = vrot.slane %v2611_v17, %v4869_v50  ;;  %v2620_v21 = vrot.slane %v2611_v17, %v4866_v49 }
 0x2e0   :  { %3324 = vmatprep.subr.bf16.mxu0 %v4521_v22  ;;  %3410 = vmatprep.subr.bf16.mxu1 %v4524_v23  ;;  %v3463_v22 = vrot.slane %v3454_v16, %v4869_v50  ;;  %v2628_v23 = vrot.slane %v2611_v17, %v4872_v51 }
 0x2e2   :  { %v3483_v46 = vrot.slane %v3463_v22, %v4861_v47 }
 0x2e3   :  { %3325 = vmatpush1.bf16.msra.mxu0 %v4519_v53  ;;  %3411 = vmatpush1.bf16.msra.mxu1 %v4522_v24 }
 0x2e4   :  { %3326 = vmatprep.subr.bf16.mxu0 %v4527_v25  ;;  %3412 = vmatprep.subr.bf16.mxu1 %v4530_v26 }
 0x2e7   :  { %3327 = vmatpush1.bf16.msra.mxu0 %v4525_v44  ;;  %3413 = vmatpush1.bf16.msra.mxu1 %v4528_v28  ;;  %v3487_v44 = vrot.slane %v3467_v18, %v4861_v47 }
 0x2e8   :  { %3328 = vmatprep.subr.bf16.mxu0 %v4533_v29  ;;  %3414 = vmatprep.subr.bf16.mxu1 %v4536_v30 }
 0x2eb   :  { %3329 = vmatpush1.bf16.msra.mxu0 %v4531_v31  ;;  %3415 = vmatpush1.bf16.msra.mxu1 %v4534_v32 }
 0x2ec   :  { %3330 = vmatprep.subr.bf16.mxu0 %v4539_v7  ;;  %3416 = vmatprep.subr.bf16.mxu1 %v4542_v33 }
 0x2ef   :  { %3331 = vmatpush1.bf16.msra.mxu0 %v4537_v34  ;;  %3417 = vmatpush1.bf16.msra.mxu1 %v4540_v35 }
 0x2f0   :  { %3332 = vmatprep.subr.bf16.mxu0 %v4545_v4  ;;  %3418 = vmatprep.subr.bf16.mxu1 %v4548_v37 }
 0x2f3   :  { %3333 = vmatpush1.bf16.msra.mxu0 %v4543_v38  ;;  %3419 = vmatpush1.bf16.msra.mxu1 %v4546_v39 }
 0x2f4   :  { %3334 = vmatprep.subr.bf16.mxu0 %v4551_v40  ;;  %3420 = vmatprep.subr.bf16.mxu1 %v4554_v41 }
 0x2f7   :  { %3335 = vmatpush1.bf16.msra.mxu0 %v4549_v42  ;;  %3421 = vmatpush1.bf16.msra.mxu1 %v4552_v43 }
 0x2f8   :  { %3336 = vmatprep.subr.bf16.mxu0 %v4557_v45  ;;  %3422 = vmatprep.subr.bf16.mxu1 %v4560_v52 }
 0x2fb   :  { %3337 = vmatpush1.bf16.msra.mxu0 %v4555_v54  ;;  %3423 = vmatpush1.bf16.msra.mxu1 %v4558_v55 }
 0x2fc   :  { %3338 = vmatprep.subr.bf16.mxu0 %v4563_v56  ;;  %3424 = vmatprep.subr.bf16.mxu1 %v4566_v58 }
 0x2ff   :  { %3339 = vmatpush1.bf16.msra.mxu0 %v4561_v59  ;;  %3425 = vmatpush1.bf16.msra.mxu1 %v4564_v60 }
 0x300   :  { %3340 = vmatprep.subr.bf16.mxu0 %v4569_v61  ;;  %3426 = vmatprep.subr.bf16.mxu1 %v4572_v62 }
 0x303   :  { %3341 = vmatpush1.bf16.msra.mxu0 %v4567_v63  ;;  %3427 = vmatpush1.bf16.msra.mxu1 %v4570_v0 }
 0x304   :  { %3342 = vmatprep.subr.bf16.mxu0 %v4575_v1  ;;  %3428 = vmatprep.subr.bf16.mxu1 %v4578_v2  ;;  %v3511_v2 = vstv %s4970_s10 }
 0x307   :  { %3343 = vmatpush1.bf16.msra.mxu0 %v4573_v48  ;;  %3429 = vmatpush1.bf16.msra.mxu1 %v4576_v3 }
 0x308   :  { %3344 = vmatprep.subr.bf16.mxu0 %v4581_v6  ;;  %3430 = vmatprep.subr.bf16.mxu1 %v4584_v8 }
 0x30b   :  { %3345 = vmatpush1.bf16.msra.mxu0 %v4579_v9  ;;  %3431 = vmatpush1.bf16.msra.mxu1 %v4582_v10 }
 0x30c   :  { %3346 = vmatprep.subr.bf16.mxu0 %v4587_v11  ;;  %3432 = vmatprep.subr.bf16.mxu1 %v4590_v12 }
 0x30f   :  { %3347 = vmatpush1.bf16.msra.mxu0 %v4585_v13  ;;  %3433 = vmatpush1.bf16.msra.mxu1 %v4588_v14 }
 0x312   :  { %3349 = vmatmul.mubr.bf16.vlgmr.msra.gmra.mrb[12].mxu0 %v4921_v5  ;;  %3435 = vmatmul.mubr.bf16.vlgmr.msra.gmra.mrb[12].mxu1 %v4921_v5  ;;  %v3471_v5 = vrot.slane %v3454_v16, %v142_v36 }
 0x314   :  { %v3491_v50 = vrot.slane %v3471_v5, %v4861_v47 }
 0x3e5   :  { %v3350_v53 = vpop.f32.mrb[12].mxu0  ;;  %v3436_v24 = vpop.f32.mrb[12].mxu1 }
 0x3e6   :  { %v3949_v25 = vadd.f32 %v3350_v53, %v2616_v27  ;;  %v3953_v26 = vadd.f32 %v3436_v24, %v2624_v20  ;;  %v3352_v28 = vpop.f32.mrb[13].mxu0  ;;  %v3438_v29 = vpop.f32.mrb[13].mxu1 }
 0x3e7   :  { %v3950_v30 = vadd.f32 %v3352_v28, %v2620_v21  ;;  %v3954_v36 = vadd.f32 %v3438_v29, %v2628_v23  ;;  %v3354_v31 = vpop.f32.mrb[14].mxu0  ;;  %v3440_v49 = vpop.f32.mrb[14].mxu1 }
 0x3e8   :  { %v3445_v32 = vmax.f32 %v3949_v25, 0.0  ;;  %v3447_v51 = vmax.f32 %v3953_v26, 0.0  ;;  %v3951_v7 = vadd.f32 %v3354_v31, %v2616_v27  ;;  %v3955_v33 = vadd.f32 %v3440_v49, %v2624_v20  ;;  %v3356_v34 = vpop.f32.mrb[15].mxu0  ;;  %v3442_v35 = vpop.f32.mrb[15].mxu1 }
 0x3e9   :  { %v3446_v4 = vmax.f32 %v3950_v30, 0.0  ;;  %v3448_v37 = vmax.f32 %v3954_v36, 0.0  ;;  %v3952_v38 = vadd.f32 %v3356_v34, %v2620_v21  ;;  %v3956_v39 = vadd.f32 %v3442_v35, %v2628_v23 }
 0x3ea   :  { %v3492_v40 = vmul.f32 %v3479_v57, %v3445_v32  ;;  %v3494_v41 = vmul.f32 %v3487_v44, %v3447_v51  ;;  %v3449_v42 = vmax.f32 %v3951_v7, 0.0  ;;  %v3451_v43 = vmax.f32 %v3955_v33, 0.0 }
 0x3eb   :  { %v3493_v45 = vmul.f32 %v3483_v46, %v3446_v4  ;;  %v3450_v52 = vmax.f32 %v3952_v38, 0.0  ;;  %v3452_v54 = vmax.f32 %v3956_v39, 0.0  ;;  %v3495_v55 = vmul.f32 %v3491_v50, %v3448_v37 }
 0x3ec   :  { %v3496_v56 = vmul.f32 %v3479_v57, %v3449_v42  ;;  %v3498_v47 = vmul.f32 %v3487_v44, %v3451_v43 }
 0x3ed   :  { %v3497_v58 = vmul.f32 %v3483_v46, %v3450_v52  ;;  %v3499_v59 = vmul.f32 %v3491_v50, %v3452_v54  ;;  %v3500_v60 = vadd.f32 %v3493_v45, %v3492_v40 }
 0x3ef   :  { %v3505_v61 = vadd.f32 %v3497_v58, %v3496_v56  ;;  %v3501_v62 = vadd.f32 %v3500_v60, %v3494_v41 }
 0x3f1   :  { %v3502_v63 = vadd.f32 %v3501_v62, %v3495_v55  ;;  %v3506_v0 = vadd.f32 %v3505_v61, %v3498_v47 }
 0x3f3   :  { %3503 = vadd.xlane.f32.xlu0 %v3502_v63  ;;  %v3507_v1 = vadd.f32 %v3506_v0, %v3499_v59 }
 0x3f7   :  { %3508 = vadd.xlane.f32.xlu0 %v3507_v1 }
 0x480   :  { %v3504_v48 = vpop.xlane.xlu0 %3503 }
 0x481   :  { %v3512_v3 = vadd.f32 %v3511_v2, %v3504_v48 }
 0x483   :  { %3514 = vst [vmem:[#allocation11] sm:$0xff] %v3512_v3 }
 0x484   :  { %v3509_v6 = vpop.xlane.xlu0 %3508 }
 0x485   :  { %v3513_v8 = vadd.f32 %v3511_v2, %v3509_v6 }
 0x487   :  { %3515 = vst [vmem:[#allocation11 + $0x8] sm:$0xff] %v3513_v8 }
 0x488   :  { %4690 = shalt.err (!%p4687_p8)
}
 0x489   :  { %s4691_s10 = scalar_lea.hbm %s4971_s11, 256 }
 0x48a   :  { %p4692_p9 = scmp.ne.s32.totalorder %s4971_s11, %s4691_s10  ;;  %p4695_p10 = scmp.lt.u32.totalorder %s4691_s10, %s4971_s11 }
 0x48c   :  { %p4697_p11 = pnand %p4695_p10, %p4692_p9 }
 0x48e   :  { %4700 = shalt.err (!%p4697_p11)
}
 0x48f   :  { %s4719_s26 = smov 128   ;;  %s4720_s27 = smov 8  }
 0x490   :  { %3527 = dma.vmem_to_hbm [thread:$0]  %s3522_s17, 256, %s4971_s11, [#allocation5], %s4719_s26, %s4719_s26, %s4720_s27  }
 0x491   :  { %4707 = dma.done.wait [#allocation5], 256  }
 0x492   :  { %4708 = vsyncadd [#allocation5], 4294967040 }
 0x493   :  { %3531 = vsyncpa [#allocation4], 1 }
 0x494   :  { %3532 = vsyncpa [#allocation7], 1 }
 0x495   :  { %3533 = vsyncpa [#allocation10], 1 }
 0x496   :  { %3534 = vsyncpa [#allocation5], 1 }

</bundles_post_ra>
